<compile_context>
chip_gen: v7x
topology: tpu7x:2x2x1
jax: 0.10.0
libtpu: 0.0.40
codegen_flags: <defaults>
</compile_context>

<pallas_src>
import functools
import math

import jax
import jax.numpy as jnp
from jax.experimental import pallas as pl
from jax.experimental.pallas import tpu as pltpu


def _round_up(x: int, m: int) -> int:
    return (x + m - 1) // m * m


def sngp_kernel(x_ref, win_ref, bin_ref, wres_ref, bres_ref,
                wft_ref, gpb_ref, wlt_ref, o_ref, *, n_blocks):
    """Fused forward for one batch tile.

    x_ref   : (tn, D_in)        input rows
    win_ref : (D_in, H)         fc_in weight (pre-transposed)
    bin_ref : (1, H)            fc_in bias
    wres_ref: (n_blocks, H, H)  residual-block weights (pre-transposed)
    bres_ref: (n_blocks, H)     residual-block biases
    wft_ref : (H, R)            feature weight, pre-transposed & 1/lengthscale folded in
    gpb_ref : (1, R)            feature bias
    wlt_ref : (R, C_pad)        GP output weight, pre-transposed, scale folded in,
                                zero-padded to a lane-dense 128-wide tile
    o_ref   : (tn, C_pad)       logits (padded)
    """
    # fc_in + ReLU
    h = jnp.dot(x_ref[...], win_ref[...], preferred_element_type=jnp.float32)
    h = jnp.maximum(h + bin_ref[...], 0.0)

    # 12 residual blocks: x + relu(dropout(fc(x)));  dropout == identity (eval)
    for i in range(n_blocks):
        w_i = wres_ref[i]                       # (H, H)
        b_i = bres_ref[pl.ds(i, 1), :]          # (1, H)
        out = jnp.dot(h, w_i, preferred_element_type=jnp.float32) + b_i
        h = h + jnp.maximum(out, 0.0)

    # Random-feature GP head: scales are folded into wft / wlt at prep time.
    proj = jnp.dot(h, wft_ref[...], preferred_element_type=jnp.float32)
    feats = jnp.cos(proj + gpb_ref[...])
    o_ref[...] = jnp.dot(feats, wlt_ref[...], preferred_element_type=jnp.float32)


def prepare_params(w_in, b_in, w_res, b_res,
                   feature_weight, feature_bias, linear_weight,
                   lengthscale_param, outputscale_param):
    """One-time parameter prep (traceable; no host syncs, no per-call transposes).

    Inputs are in PyTorch layout:
      w_in:  (H, D_in),  b_in: (H,)
      w_res: (n_blocks, H, H),  b_res: (n_blocks, H)
      feature_weight: (R, H),   feature_bias: (R,)
      linear_weight:  (C, R)
    """
    lengthscale = jax.nn.softplus(lengthscale_param)
    outputscale = jax.nn.softplus(outputscale_param)
    R = feature_weight.shape[0]
    C = linear_weight.shape[0]

    inv_l = 1.0 / lengthscale
    feat_scale = outputscale * jnp.sqrt(2.0 / R)

    wft = (feature_weight.T * inv_l).astype(jnp.float32)        # (H, R)
    wlt = (linear_weight.T * feat_scale).astype(jnp.float32)    # (R, C)

    # Lane-dense output: pad columns to a multiple of 128 with zeros.
    c_pad = max(128, _round_up(C, 128))
    wlt_pad = jnp.zeros((R, c_pad), jnp.float32).at[:, :C].set(wlt)

    params = dict(
        w_in=w_in.T.astype(jnp.float32),                        # (D_in, H)
        b_in=b_in.reshape(1, -1).astype(jnp.float32),           # (1, H)
        w_res=jnp.transpose(w_res, (0, 2, 1)).astype(jnp.float32),  # (nb, H, H)
        b_res=b_res.astype(jnp.float32),                        # (nb, H)
        wft=wft,                                                # (H, R)
        gp_bias=feature_bias.reshape(1, -1).astype(jnp.float32),  # (1, R)
        wlt=wlt_pad,                                            # (R, C_pad)
    )
    return params, C


def sngp_forward(x, params, out_features):
    """Full SNGP_ResFFN12_128 forward. x: (N, D_in) float32 -> (N, out_features)."""
    N, D_in = x.shape
    H = params['w_in'].shape[1]
    R = params['wft'].shape[1]
    C_pad = params['wlt'].shape[1]
    n_blocks = params['w_res'].shape[0]

    # Batch tiling: parallel grid axis (shards rows across TCs on v7x),
    # keeps per-tile VMEM bounded for large N.
    tn = 128 if N >= 128 else _round_up(N, 8)
    N_pad = _round_up(N, tn)
    x = x.astype(jnp.float32)
    if N_pad != N:
        x = jnp.zeros((N_pad, D_in), jnp.float32).at[:N].set(x)

    kernel = functools.partial(sngp_kernel, n_blocks=n_blocks)

    out = pl.pallas_call(
        kernel,
        out_shape=jax.ShapeDtypeStruct((N_pad, C_pad), jnp.float32),
        grid_spec=pltpu.PrefetchScalarGridSpec(
            num_scalar_prefetch=0,
            grid=(N_pad // tn,),
            in_specs=[
                pl.BlockSpec((tn, D_in), lambda i: (i, 0)),           # x tile
                pl.BlockSpec((D_in, H), lambda i: (0, 0)),            # fc_in W^T
                pl.BlockSpec((1, H), lambda i: (0, 0)),               # fc_in b
                pl.BlockSpec((n_blocks, H, H), lambda i: (0, 0, 0)),  # res W^T
                pl.BlockSpec((n_blocks, H), lambda i: (0, 0)),        # res b
                pl.BlockSpec((H, R), lambda i: (0, 0)),               # scaled WfT
                pl.BlockSpec((1, R), lambda i: (0, 0)),               # GP bias
                pl.BlockSpec((R, C_pad), lambda i: (0, 0)),           # scaled WlT (padded)
            ],
            out_specs=pl.BlockSpec((tn, C_pad), lambda i: (i, 0)),
        ),
        compiler_params=pltpu.CompilerParams(
            dimension_semantics=("parallel",)),
    )(x, params['w_in'], params['b_in'], params['w_res'], params['b_res'],
      params['wft'], params['gp_bias'], params['wlt'])

    return out[:N, :out_features]


def sngp_reference(x, w_in, b_in, w_res, b_res,
                   feature_weight, feature_bias, linear_weight,
                   lengthscale_param, outputscale_param):
    """Plain-JAX reference matching the PyTorch forward (eval mode)."""
    h = jnp.maximum(x @ w_in.T + b_in, 0.0)
    for i in range(w_res.shape[0]):
        out = jnp.maximum(h @ w_res[i].T + b_res[i], 0.0)
        h = h + out
    lengthscale = jax.nn.softplus(lengthscale_param)
    outputscale = jax.nn.softplus(outputscale_param)
    R = feature_weight.shape[0]
    proj = h @ (feature_weight / lengthscale).T + feature_bias
    feats = outputscale * jnp.sqrt(2.0 / R) * jnp.cos(proj)
    return feats @ linear_weight.T


if __name__ == "__main__":
    # Module hyperparameters (small shapes for the test; hidden=128, 12 blocks,
    # rank=512 per the module defaults).
    input_size = 32
    output_size = 10
    hidden = 128
    n_blocks = 12
    rank = 512
    batch = 8
    lengthscale = 0.4
    outputscale = 5.0

    key = jax.random.PRNGKey(0)
    keys = jax.random.split(key, 8)

    x = jax.random.normal(keys[0], (batch, input_size), dtype=jnp.float32)

    # Deterministic parameter init (PyTorch-style layouts, modest scales).
    w_in = jax.random.normal(keys[1], (hidden, input_size), jnp.float32) / math.sqrt(input_size)
    b_in = 0.1 * jax.random.normal(keys[2], (hidden,), jnp.float32)
    w_res = jax.random.normal(keys[3], (n_blocks, hidden, hidden), jnp.float32) * (0.2 / math.sqrt(hidden))
    b_res = 0.1 * jax.random.normal(keys[4], (n_blocks, hidden), jnp.float32)

    feature_weight = jax.random.normal(keys[5], (rank, hidden), jnp.float32)          # randn buffer
    feature_bias = 2.0 * jnp.pi * jax.random.uniform(keys[6], (rank,), jnp.float32)    # rand buffer
    bound = 1.0 / math.sqrt(rank)
    linear_weight = jax.random.uniform(keys[7], (output_size, rank), jnp.float32,
                                       minval=-bound, maxval=bound)

    # raw params = log(expm1(x)); the softplus in prepare_params recovers x.
    lengthscale_param = jnp.log(jnp.expm1(jnp.float32(lengthscale)))
    outputscale_param = jnp.log(jnp.expm1(jnp.float32(outputscale)))

    params, C = prepare_params(w_in, b_in, w_res, b_res,
                               feature_weight, feature_bias, linear_weight,
                               lengthscale_param, outputscale_param)

    logits = sngp_forward(x, params, output_size)
    logits = jax.block_until_ready(logits)

    with jax.default_matmul_precision("highest"):
        ref = sngp_reference(x, w_in, b_in, w_res, b_res,
                             feature_weight, feature_bias, linear_weight,
                             lengthscale_param, outputscale_param)
    ref = jax.block_until_ready(ref)

    assert logits.shape == (batch, output_size)
    assert jnp.allclose(logits, ref, atol=2e-3, rtol=2e-3), "mismatch vs reference"

    # TODO(synk): predict_proba / precision-matrix update paths (MC sampling,
    # matrix inverse) are inference-time utilities outside forward(); not kernelized.
    print("KERNEL_OK")
</pallas_src>

<mosaic_0001>
module attributes {stable_mosaic.version = 11 : i64} {
  func.func @sngp_kernel(%arg0: i32, %arg1: memref<8x32xf32, #tpu.memory_space<vmem>>, %arg2: memref<32x128xf32, #tpu.memory_space<vmem>>, %arg3: memref<1x128xf32, #tpu.memory_space<vmem>>, %arg4: memref<12x128x128xf32, #tpu.memory_space<vmem>>, %arg5: memref<12x128xf32, #tpu.memory_space<vmem>>, %arg6: memref<128x512xf32, #tpu.memory_space<vmem>>, %arg7: memref<1x512xf32, #tpu.memory_space<vmem>>, %arg8: memref<512x128xf32, #tpu.memory_space<vmem>>, %arg9: memref<8x128xf32, #tpu.memory_space<vmem>>) attributes {dimension_semantics = [#tpu.dimension_semantics<parallel>], iteration_bounds = array<i64: 1>, scalar_prefetch = 0 : i64, scratch_operands = 0 : i64, tpu.core_type = #tpu.core_type<tc>, window_params = [{transform_indices = @transform_0, window_bounds = array<i64: 8, 32>}, {pipeline_mode = #tpu.pipeline_mode<synchronous>, transform_indices = @transform_1, window_bounds = array<i64: 32, 128>}, {pipeline_mode = #tpu.pipeline_mode<synchronous>, transform_indices = @transform_2, window_bounds = array<i64: 1, 128>}, {pipeline_mode = #tpu.pipeline_mode<synchronous>, transform_indices = @transform_3, window_bounds = array<i64: 12, 128, 128>}, {pipeline_mode = #tpu.pipeline_mode<synchronous>, transform_indices = @transform_4, window_bounds = array<i64: 12, 128>}, {pipeline_mode = #tpu.pipeline_mode<synchronous>, transform_indices = @transform_5, window_bounds = array<i64: 128, 512>}, {pipeline_mode = #tpu.pipeline_mode<synchronous>, transform_indices = @transform_6, window_bounds = array<i64: 1, 512>}, {pipeline_mode = #tpu.pipeline_mode<synchronous>, transform_indices = @transform_7, window_bounds = array<i64: 512, 128>}, {transform_indices = @transform_8, window_bounds = array<i64: 8, 128>}]} {
    %c0 = arith.constant 0 : index
    %c0_0 = arith.constant 0 : index
    %0 = vector.load %arg1[%c0, %c0_0] : memref<8x32xf32, #tpu.memory_space<vmem>>, vector<8x32xf32>
    %c0_1 = arith.constant 0 : index
    %c0_2 = arith.constant 0 : index
    %1 = vector.load %arg2[%c0_1, %c0_2] : memref<32x128xf32, #tpu.memory_space<vmem>>, vector<32x128xf32>
    %cst = arith.constant dense<0.000000e+00> : vector<8x128xf32>
    %2 = tpu.matmul %0, %1, %cst {dimension_numbers = #tpu.dot_dimension_numbers<[1], [0], [0], [1], [0, 0, 1, 1], [], []>} : vector<8x32xf32>, vector<32x128xf32>, vector<8x128xf32> -> vector<8x128xf32>
    %c0_3 = arith.constant 0 : index
    %c0_4 = arith.constant 0 : index
    %3 = vector.load %arg3[%c0_3, %c0_4] : memref<1x128xf32, #tpu.memory_space<vmem>>, vector<1x128xf32>
    %4 = vector.broadcast %3 : vector<1x128xf32> to vector<8x128xf32>
    %5 = arith.addf %2, %4 : vector<8x128xf32>
    %cst_5 = arith.constant 0.000000e+00 : f32
    %6 = vector.broadcast %cst_5 : f32 to vector<8x128xf32>
    %7 = arith.maximumf %5, %6 : vector<8x128xf32>
    %c0_6 = arith.constant 0 : index
    %c0_7 = arith.constant 0 : index
    %c0_8 = arith.constant 0 : index
    %8 = vector.load %arg4[%c0_6, %c0_7, %c0_8] : memref<12x128x128xf32, #tpu.memory_space<vmem>>, vector<1x128x128xf32>
    %9 = vector.shape_cast %8 : vector<1x128x128xf32> to vector<128x128xf32>
    %c0_9 = arith.constant 0 : index
    %c0_10 = arith.constant 0 : index
    %10 = vector.load %arg5[%c0_9, %c0_10] : memref<12x128xf32, #tpu.memory_space<vmem>>, vector<1x128xf32>
    %cst_11 = arith.constant dense<0.000000e+00> : vector<8x128xf32>
    %11 = tpu.matmul %7, %9, %cst_11 {dimension_numbers = #tpu.dot_dimension_numbers<[1], [0], [0], [1], [0, 0, 1, 1], [], []>} : vector<8x128xf32>, vector<128x128xf32>, vector<8x128xf32> -> vector<8x128xf32>
    %12 = vector.broadcast %10 : vector<1x128xf32> to vector<8x128xf32>
    %13 = arith.addf %11, %12 : vector<8x128xf32>
    %cst_12 = arith.constant 0.000000e+00 : f32
    %14 = vector.broadcast %cst_12 : f32 to vector<8x128xf32>
    %15 = arith.maximumf %13, %14 : vector<8x128xf32>
    %16 = arith.addf %7, %15 : vector<8x128xf32>
    %c1 = arith.constant 1 : index
    %c0_13 = arith.constant 0 : index
    %c0_14 = arith.constant 0 : index
    %17 = vector.load %arg4[%c1, %c0_13, %c0_14] : memref<12x128x128xf32, #tpu.memory_space<vmem>>, vector<1x128x128xf32>
    %18 = vector.shape_cast %17 : vector<1x128x128xf32> to vector<128x128xf32>
    %c1_15 = arith.constant 1 : index
    %c0_16 = arith.constant 0 : index
    %19 = vector.load %arg5[%c1_15, %c0_16] : memref<12x128xf32, #tpu.memory_space<vmem>>, vector<1x128xf32>
    %cst_17 = arith.constant dense<0.000000e+00> : vector<8x128xf32>
    %20 = tpu.matmul %16, %18, %cst_17 {dimension_numbers = #tpu.dot_dimension_numbers<[1], [0], [0], [1], [0, 0, 1, 1], [], []>} : vector<8x128xf32>, vector<128x128xf32>, vector<8x128xf32> -> vector<8x128xf32>
    %21 = vector.broadcast %19 : vector<1x128xf32> to vector<8x128xf32>
    %22 = arith.addf %20, %21 : vector<8x128xf32>
    %cst_18 = arith.constant 0.000000e+00 : f32
    %23 = vector.broadcast %cst_18 : f32 to vector<8x128xf32>
    %24 = arith.maximumf %22, %23 : vector<8x128xf32>
    %25 = arith.addf %16, %24 : vector<8x128xf32>
    %c2 = arith.constant 2 : index
    %c0_19 = arith.constant 0 : index
    %c0_20 = arith.constant 0 : index
    %26 = vector.load %arg4[%c2, %c0_19, %c0_20] : memref<12x128x128xf32, #tpu.memory_space<vmem>>, vector<1x128x128xf32>
    %27 = vector.shape_cast %26 : vector<1x128x128xf32> to vector<128x128xf32>
    %c2_21 = arith.constant 2 : index
    %c0_22 = arith.constant 0 : index
    %28 = vector.load %arg5[%c2_21, %c0_22] : memref<12x128xf32, #tpu.memory_space<vmem>>, vector<1x128xf32>
    %cst_23 = arith.constant dense<0.000000e+00> : vector<8x128xf32>
    %29 = tpu.matmul %25, %27, %cst_23 {dimension_numbers = #tpu.dot_dimension_numbers<[1], [0], [0], [1], [0, 0, 1, 1], [], []>} : vector<8x128xf32>, vector<128x128xf32>, vector<8x128xf32> -> vector<8x128xf32>
    %30 = vector.broadcast %28 : vector<1x128xf32> to vector<8x128xf32>
    %31 = arith.addf %29, %30 : vector<8x128xf32>
    %cst_24 = arith.constant 0.000000e+00 : f32
    %32 = vector.broadcast %cst_24 : f32 to vector<8x128xf32>
    %33 = arith.maximumf %31, %32 : vector<8x128xf32>
    %34 = arith.addf %25, %33 : vector<8x128xf32>
    %c3 = arith.constant 3 : index
    %c0_25 = arith.constant 0 : index
    %c0_26 = arith.constant 0 : index
    %35 = vector.load %arg4[%c3, %c0_25, %c0_26] : memref<12x128x128xf32, #tpu.memory_space<vmem>>, vector<1x128x128xf32>
    %36 = vector.shape_cast %35 : vector<1x128x128xf32> to vector<128x128xf32>
    %c3_27 = arith.constant 3 : index
    %c0_28 = arith.constant 0 : index
    %37 = vector.load %arg5[%c3_27, %c0_28] : memref<12x128xf32, #tpu.memory_space<vmem>>, vector<1x128xf32>
    %cst_29 = arith.constant dense<0.000000e+00> : vector<8x128xf32>
    %38 = tpu.matmul %34, %36, %cst_29 {dimension_numbers = #tpu.dot_dimension_numbers<[1], [0], [0], [1], [0, 0, 1, 1], [], []>} : vector<8x128xf32>, vector<128x128xf32>, vector<8x128xf32> -> vector<8x128xf32>
    %39 = vector.broadcast %37 : vector<1x128xf32> to vector<8x128xf32>
    %40 = arith.addf %38, %39 : vector<8x128xf32>
    %cst_30 = arith.constant 0.000000e+00 : f32
    %41 = vector.broadcast %cst_30 : f32 to vector<8x128xf32>
    %42 = arith.maximumf %40, %41 : vector<8x128xf32>
    %43 = arith.addf %34, %42 : vector<8x128xf32>
    %c4 = arith.constant 4 : index
    %c0_31 = arith.constant 0 : index
    %c0_32 = arith.constant 0 : index
    %44 = vector.load %arg4[%c4, %c0_31, %c0_32] : memref<12x128x128xf32, #tpu.memory_space<vmem>>, vector<1x128x128xf32>
    %45 = vector.shape_cast %44 : vector<1x128x128xf32> to vector<128x128xf32>
    %c4_33 = arith.constant 4 : index
    %c0_34 = arith.constant 0 : index
    %46 = vector.load %arg5[%c4_33, %c0_34] : memref<12x128xf32, #tpu.memory_space<vmem>>, vector<1x128xf32>
    %cst_35 = arith.constant dense<0.000000e+00> : vector<8x128xf32>
    %47 = tpu.matmul %43, %45, %cst_35 {dimension_numbers = #tpu.dot_dimension_numbers<[1], [0], [0], [1], [0, 0, 1, 1], [], []>} : vector<8x128xf32>, vector<128x128xf32>, vector<8x128xf32> -> vector<8x128xf32>
    %48 = vector.broadcast %46 : vector<1x128xf32> to vector<8x128xf32>
    %49 = arith.addf %47, %48 : vector<8x128xf32>
    %cst_36 = arith.constant 0.000000e+00 : f32
    %50 = vector.broadcast %cst_36 : f32 to vector<8x128xf32>
    %51 = arith.maximumf %49, %50 : vector<8x128xf32>
    %52 = arith.addf %43, %51 : vector<8x128xf32>
    %c5 = arith.constant 5 : index
    %c0_37 = arith.constant 0 : index
    %c0_38 = arith.constant 0 : index
    %53 = vector.load %arg4[%c5, %c0_37, %c0_38] : memref<12x128x128xf32, #tpu.memory_space<vmem>>, vector<1x128x128xf32>
    %54 = vector.shape_cast %53 : vector<1x128x128xf32> to vector<128x128xf32>
    %c5_39 = arith.constant 5 : index
    %c0_40 = arith.constant 0 : index
    %55 = vector.load %arg5[%c5_39, %c0_40] : memref<12x128xf32, #tpu.memory_space<vmem>>, vector<1x128xf32>
    %cst_41 = arith.constant dense<0.000000e+00> : vector<8x128xf32>
    %56 = tpu.matmul %52, %54, %cst_41 {dimension_numbers = #tpu.dot_dimension_numbers<[1], [0], [0], [1], [0, 0, 1, 1], [], []>} : vector<8x128xf32>, vector<128x128xf32>, vector<8x128xf32> -> vector<8x128xf32>
    %57 = vector.broadcast %55 : vector<1x128xf32> to vector<8x128xf32>
    %58 = arith.addf %56, %57 : vector<8x128xf32>
    %cst_42 = arith.constant 0.000000e+00 : f32
    %59 = vector.broadcast %cst_42 : f32 to vector<8x128xf32>
    %60 = arith.maximumf %58, %59 : vector<8x128xf32>
    %61 = arith.addf %52, %60 : vector<8x128xf32>
    %c6 = arith.constant 6 : index
    %c0_43 = arith.constant 0 : index
    %c0_44 = arith.constant 0 : index
    %62 = vector.load %arg4[%c6, %c0_43, %c0_44] : memref<12x128x128xf32, #tpu.memory_space<vmem>>, vector<1x128x128xf32>
    %63 = vector.shape_cast %62 : vector<1x128x128xf32> to vector<128x128xf32>
    %c6_45 = arith.constant 6 : index
    %c0_46 = arith.constant 0 : index
    %64 = vector.load %arg5[%c6_45, %c0_46] : memref<12x128xf32, #tpu.memory_space<vmem>>, vector<1x128xf32>
    %cst_47 = arith.constant dense<0.000000e+00> : vector<8x128xf32>
    %65 = tpu.matmul %61, %63, %cst_47 {dimension_numbers = #tpu.dot_dimension_numbers<[1], [0], [0], [1], [0, 0, 1, 1], [], []>} : vector<8x128xf32>, vector<128x128xf32>, vector<8x128xf32> -> vector<8x128xf32>
    %66 = vector.broadcast %64 : vector<1x128xf32> to vector<8x128xf32>
    %67 = arith.addf %65, %66 : vector<8x128xf32>
    %cst_48 = arith.constant 0.000000e+00 : f32
    %68 = vector.broadcast %cst_48 : f32 to vector<8x128xf32>
    %69 = arith.maximumf %67, %68 : vector<8x128xf32>
    %70 = arith.addf %61, %69 : vector<8x128xf32>
    %c7 = arith.constant 7 : index
    %c0_49 = arith.constant 0 : index
    %c0_50 = arith.constant 0 : index
    %71 = vector.load %arg4[%c7, %c0_49, %c0_50] : memref<12x128x128xf32, #tpu.memory_space<vmem>>, vector<1x128x128xf32>
    %72 = vector.shape_cast %71 : vector<1x128x128xf32> to vector<128x128xf32>
    %c7_51 = arith.constant 7 : index
    %c0_52 = arith.constant 0 : index
    %73 = vector.load %arg5[%c7_51, %c0_52] : memref<12x128xf32, #tpu.memory_space<vmem>>, vector<1x128xf32>
    %cst_53 = arith.constant dense<0.000000e+00> : vector<8x128xf32>
    %74 = tpu.matmul %70, %72, %cst_53 {dimension_numbers = #tpu.dot_dimension_numbers<[1], [0], [0], [1], [0, 0, 1, 1], [], []>} : vector<8x128xf32>, vector<128x128xf32>, vector<8x128xf32> -> vector<8x128xf32>
    %75 = vector.broadcast %73 : vector<1x128xf32> to vector<8x128xf32>
    %76 = arith.addf %74, %75 : vector<8x128xf32>
    %cst_54 = arith.constant 0.000000e+00 : f32
    %77 = vector.broadcast %cst_54 : f32 to vector<8x128xf32>
    %78 = arith.maximumf %76, %77 : vector<8x128xf32>
    %79 = arith.addf %70, %78 : vector<8x128xf32>
    %c8 = arith.constant 8 : index
    %c0_55 = arith.constant 0 : index
    %c0_56 = arith.constant 0 : index
    %80 = vector.load %arg4[%c8, %c0_55, %c0_56] : memref<12x128x128xf32, #tpu.memory_space<vmem>>, vector<1x128x128xf32>
    %81 = vector.shape_cast %80 : vector<1x128x128xf32> to vector<128x128xf32>
    %c8_57 = arith.constant 8 : index
    %c0_58 = arith.constant 0 : index
    %82 = vector.load %arg5[%c8_57, %c0_58] : memref<12x128xf32, #tpu.memory_space<vmem>>, vector<1x128xf32>
    %cst_59 = arith.constant dense<0.000000e+00> : vector<8x128xf32>
    %83 = tpu.matmul %79, %81, %cst_59 {dimension_numbers = #tpu.dot_dimension_numbers<[1], [0], [0], [1], [0, 0, 1, 1], [], []>} : vector<8x128xf32>, vector<128x128xf32>, vector<8x128xf32> -> vector<8x128xf32>
    %84 = vector.broadcast %82 : vector<1x128xf32> to vector<8x128xf32>
    %85 = arith.addf %83, %84 : vector<8x128xf32>
    %cst_60 = arith.constant 0.000000e+00 : f32
    %86 = vector.broadcast %cst_60 : f32 to vector<8x128xf32>
    %87 = arith.maximumf %85, %86 : vector<8x128xf32>
    %88 = arith.addf %79, %87 : vector<8x128xf32>
    %c9 = arith.constant 9 : index
    %c0_61 = arith.constant 0 : index
    %c0_62 = arith.constant 0 : index
    %89 = vector.load %arg4[%c9, %c0_61, %c0_62] : memref<12x128x128xf32, #tpu.memory_space<vmem>>, vector<1x128x128xf32>
    %90 = vector.shape_cast %89 : vector<1x128x128xf32> to vector<128x128xf32>
    %c9_63 = arith.constant 9 : index
    %c0_64 = arith.constant 0 : index
    %91 = vector.load %arg5[%c9_63, %c0_64] : memref<12x128xf32, #tpu.memory_space<vmem>>, vector<1x128xf32>
    %cst_65 = arith.constant dense<0.000000e+00> : vector<8x128xf32>
    %92 = tpu.matmul %88, %90, %cst_65 {dimension_numbers = #tpu.dot_dimension_numbers<[1], [0], [0], [1], [0, 0, 1, 1], [], []>} : vector<8x128xf32>, vector<128x128xf32>, vector<8x128xf32> -> vector<8x128xf32>
    %93 = vector.broadcast %91 : vector<1x128xf32> to vector<8x128xf32>
    %94 = arith.addf %92, %93 : vector<8x128xf32>
    %cst_66 = arith.constant 0.000000e+00 : f32
    %95 = vector.broadcast %cst_66 : f32 to vector<8x128xf32>
    %96 = arith.maximumf %94, %95 : vector<8x128xf32>
    %97 = arith.addf %88, %96 : vector<8x128xf32>
    %c10 = arith.constant 10 : index
    %c0_67 = arith.constant 0 : index
    %c0_68 = arith.constant 0 : index
    %98 = vector.load %arg4[%c10, %c0_67, %c0_68] : memref<12x128x128xf32, #tpu.memory_space<vmem>>, vector<1x128x128xf32>
    %99 = vector.shape_cast %98 : vector<1x128x128xf32> to vector<128x128xf32>
    %c10_69 = arith.constant 10 : index
    %c0_70 = arith.constant 0 : index
    %100 = vector.load %arg5[%c10_69, %c0_70] : memref<12x128xf32, #tpu.memory_space<vmem>>, vector<1x128xf32>
    %cst_71 = arith.constant dense<0.000000e+00> : vector<8x128xf32>
    %101 = tpu.matmul %97, %99, %cst_71 {dimension_numbers = #tpu.dot_dimension_numbers<[1], [0], [0], [1], [0, 0, 1, 1], [], []>} : vector<8x128xf32>, vector<128x128xf32>, vector<8x128xf32> -> vector<8x128xf32>
    %102 = vector.broadcast %100 : vector<1x128xf32> to vector<8x128xf32>
    %103 = arith.addf %101, %102 : vector<8x128xf32>
    %cst_72 = arith.constant 0.000000e+00 : f32
    %104 = vector.broadcast %cst_72 : f32 to vector<8x128xf32>
    %105 = arith.maximumf %103, %104 : vector<8x128xf32>
    %106 = arith.addf %97, %105 : vector<8x128xf32>
    %c11 = arith.constant 11 : index
    %c0_73 = arith.constant 0 : index
    %c0_74 = arith.constant 0 : index
    %107 = vector.load %arg4[%c11, %c0_73, %c0_74] : memref<12x128x128xf32, #tpu.memory_space<vmem>>, vector<1x128x128xf32>
    %108 = vector.shape_cast %107 : vector<1x128x128xf32> to vector<128x128xf32>
    %c11_75 = arith.constant 11 : index
    %c0_76 = arith.constant 0 : index
    %109 = vector.load %arg5[%c11_75, %c0_76] : memref<12x128xf32, #tpu.memory_space<vmem>>, vector<1x128xf32>
    %cst_77 = arith.constant dense<0.000000e+00> : vector<8x128xf32>
    %110 = tpu.matmul %106, %108, %cst_77 {dimension_numbers = #tpu.dot_dimension_numbers<[1], [0], [0], [1], [0, 0, 1, 1], [], []>} : vector<8x128xf32>, vector<128x128xf32>, vector<8x128xf32> -> vector<8x128xf32>
    %111 = vector.broadcast %109 : vector<1x128xf32> to vector<8x128xf32>
    %112 = arith.addf %110, %111 : vector<8x128xf32>
    %cst_78 = arith.constant 0.000000e+00 : f32
    %113 = vector.broadcast %cst_78 : f32 to vector<8x128xf32>
    %114 = arith.maximumf %112, %113 : vector<8x128xf32>
    %115 = arith.addf %106, %114 : vector<8x128xf32>
    %c0_79 = arith.constant 0 : index
    %c0_80 = arith.constant 0 : index
    %116 = vector.load %arg6[%c0_79, %c0_80] : memref<128x512xf32, #tpu.memory_space<vmem>>, vector<128x512xf32>
    %cst_81 = arith.constant dense<0.000000e+00> : vector<8x512xf32>
    %117 = tpu.matmul %115, %116, %cst_81 {dimension_numbers = #tpu.dot_dimension_numbers<[1], [0], [0], [1], [0, 0, 1, 1], [], []>} : vector<8x128xf32>, vector<128x512xf32>, vector<8x512xf32> -> vector<8x512xf32>
    %c0_82 = arith.constant 0 : index
    %c0_83 = arith.constant 0 : index
    %118 = vector.load %arg7[%c0_82, %c0_83] : memref<1x512xf32, #tpu.memory_space<vmem>>, vector<1x512xf32>
    %119 = vector.broadcast %118 : vector<1x512xf32> to vector<8x512xf32>
    %120 = arith.addf %117, %119 : vector<8x512xf32>
    %121 = math.cos %120 : vector<8x512xf32>
    %c0_84 = arith.constant 0 : index
    %c0_85 = arith.constant 0 : index
    %122 = vector.load %arg8[%c0_84, %c0_85] : memref<512x128xf32, #tpu.memory_space<vmem>>, vector<512x128xf32>
    %cst_86 = arith.constant dense<0.000000e+00> : vector<8x128xf32>
    %123 = tpu.matmul %121, %122, %cst_86 {dimension_numbers = #tpu.dot_dimension_numbers<[1], [0], [0], [1], [0, 0, 1, 1], [], []>} : vector<8x512xf32>, vector<512x128xf32>, vector<8x128xf32> -> vector<8x128xf32>
    %c0_87 = arith.constant 0 : index
    %c0_88 = arith.constant 0 : index
    %124 = vector.load %arg9[%c0_87, %c0_88] : memref<8x128xf32, #tpu.memory_space<vmem>>, vector<8x128xf32>
    tpu.vector_store %arg9[%c0_87, %c0_88], %123 {strides = array<i32>} : memref<8x128xf32, #tpu.memory_space<vmem>>, vector<8x128xf32>,
    return
  }
  func.func @transform_0(%arg0: i32) -> (i32, i32) {
    %c0_i32 = arith.constant 0 : i32
    %c0_i32_0 = arith.constant 0 : i32
    return %arg0, %c0_i32 : i32, i32
  }
  func.func @transform_1(%arg0: i32) -> (i32, i32) {
    %c0_i32 = arith.constant 0 : i32
    %c0_i32_0 = arith.constant 0 : i32
    %c0_i32_1 = arith.constant 0 : i32
    return %c0_i32, %c0_i32_0 : i32, i32
  }
  func.func @transform_2(%arg0: i32) -> (i32, i32) {
    %c0_i32 = arith.constant 0 : i32
    %c0_i32_0 = arith.constant 0 : i32
    %c0_i32_1 = arith.constant 0 : i32
    return %c0_i32, %c0_i32_0 : i32, i32
  }
  func.func @transform_3(%arg0: i32) -> (i32, i32, i32) {
    %c0_i32 = arith.constant 0 : i32
    %c0_i32_0 = arith.constant 0 : i32
    %c0_i32_1 = arith.constant 0 : i32
    %c0_i32_2 = arith.constant 0 : i32
    return %c0_i32, %c0_i32_0, %c0_i32_1 : i32, i32, i32
  }
  func.func @transform_4(%arg0: i32) -> (i32, i32) {
    %c0_i32 = arith.constant 0 : i32
    %c0_i32_0 = arith.constant 0 : i32
    %c0_i32_1 = arith.constant 0 : i32
    return %c0_i32, %c0_i32_0 : i32, i32
  }
  func.func @transform_5(%arg0: i32) -> (i32, i32) {
    %c0_i32 = arith.constant 0 : i32
    %c0_i32_0 = arith.constant 0 : i32
    %c0_i32_1 = arith.constant 0 : i32
    return %c0_i32, %c0_i32_0 : i32, i32
  }
  func.func @transform_6(%arg0: i32) -> (i32, i32) {
    %c0_i32 = arith.constant 0 : i32
    %c0_i32_0 = arith.constant 0 : i32
    %c0_i32_1 = arith.constant 0 : i32
    return %c0_i32, %c0_i32_0 : i32, i32
  }
  func.func @transform_7(%arg0: i32) -> (i32, i32) {
    %c0_i32 = arith.constant 0 : i32
    %c0_i32_0 = arith.constant 0 : i32
    %c0_i32_1 = arith.constant 0 : i32
    return %c0_i32, %c0_i32_0 : i32, i32
  }
  func.func @transform_8(%arg0: i32) -> (i32, i32) {
    %c0_i32 = arith.constant 0 : i32
    %c0_i32_0 = arith.constant 0 : i32
    return %arg0, %c0_i32 : i32, i32
  }
}

</mosaic_0001>

<bundles_post_ra>
// kernel: tpu_custom_call.1
= control target key start
LH: loop header
LB: loop body
LE: loop exit
PB: predicated region body
PF: predicated region fallthrough
CT: control target
= control target key end

     0   :  { %13 = vsyncpa [#allocation3], 0  ;;  %s4169_s0 = inlined_call_operand.hbm [shape: f32[8,32], index: 0, kind: input, shape index: {}]   ;;  %s4170_s1 = inlined_call_operand.hbm [shape: f32[32,128], index: 1, kind: input, shape index: {}]   ;;  %s4171_s2 = inlined_call_operand.vmem [shape: f32[1,128], index: 2, kind: input, shape index: {}]   ;;  %s4172_s3 = inlined_call_operand.hbm [shape: f32[12,128,128], index: 3, kind: input, shape index: {}]   ;;  %s4173_s4 = inlined_call_operand.hbm [shape: f32[12,128], index: 4, kind: input, shape index: {}]   ;;  %s4174_s5 = inlined_call_operand.hbm [shape: f32[128,512], index: 5, kind: input, shape index: {}]   ;;  %s4175_s6 = inlined_call_operand.vmem [shape: f32[1,512], index: 6, kind: input, shape index: {}]   ;;  %s4176_s7 = inlined_call_operand.hbm [shape: f32[512,128], index: 7, kind: input, shape index: {}]   ;;  %s4177_s8 = inlined_call_operand.hbm [shape: f32[8,128], index: 8, kind: output, shape index: {}]  }
   0x1   :  { %14 = vsyncpa [#allocation6], 0 }
   0x2   :  { %15 = vsyncpa [#allocation9], 0 }
   0x3   :  { %16 = vsyncpa [#allocation12], 0 }
   0x4   :  { %17 = vsyncpa [#allocation4], 0  ;;  %s3565_s27 = smov [#allocation5]   ;;  %s3401_s9 = scalar_lea.hbm %s4170_s1, 512 }
   0x5   :  { %s33_s28 = sshll.u32 %s3565_s27, 4  ;;  %p3402_p0 = scmp.ne.s32.totalorder %s4170_s1, %s3401_s9  ;;  %s34_s28 = int_to_ptr.vmem [resolvable:$true] %s33_s28 }
   0x6   :  { %p3405_p1 = scmp.lt.u32.totalorder %s3401_s9, %s4170_s1 }
   0x8   :  { %p3407_p2 = pnand %p3405_p1, %p3402_p0 }
   0xa   :  { %3410 = shalt.err (!%p3407_p2)
}
   0xb   :  { %s3411_s14 = scalar_lea.vmem %s34_s28, 512  ;;  %p3416_p4 = scmp.lt.s32.totalorder %s34_s28, %s34_s28 }
   0xc   :  { %p3412_p3 = scmp.ne.s32.totalorder %s34_s28, %s3411_s14  ;;  %p3417_p5 = scmp.lt.s32.totalorder %s3411_s14, %s3411_s14 }
   0xe   :  { %p3418_p6 = por %p3417_p5, %p3416_p4 }
  0x10   :  { %p3419_p7 = pnand %p3418_p6, %p3412_p3 }
  0x12   :  { %3422 = shalt.err (!%p3419_p7)
}
  0x13   :  { %s3566_s15 = smov 128   ;;  %s3567_s16 = smov 8  }
  0x14   :  { %39 = dma.hbm_to_vmem [thread:$0]  %s4170_s1, 512, %s34_s28, [#allocation6], %s3566_s15, %s3566_s15, %s3567_s16  }
  0x15   :  { %s3568_s19 = smov [#allocation8]   ;;  %s3569_s21 = smov [#allocation2]  }
  0x16   :  { %s59_s20 = sshll.u32 %s3568_s19, 4  ;;  %s24_s22 = sshll.u32 %s3569_s21, 4  ;;  %s60_s20 = int_to_ptr.vmem [resolvable:$true] %s59_s20  ;;  %s25_s22 = int_to_ptr.vmem [resolvable:$true] %s24_s22 }
  0x17   :  { %s3423_s25 = scalar_lea.hbm %s4173_s4, 256 }
  0x18   :  { %p3424_p8 = scmp.ne.s32.totalorder %s4173_s4, %s3423_s25  ;;  %p3427_p9 = scmp.lt.u32.totalorder %s3423_s25, %s4173_s4 }
  0x1a   :  { %p3429_p10 = pnand %p3427_p9, %p3424_p8 }
  0x1c   :  { %3432 = shalt.err (!%p3429_p10)
}
  0x1d   :  { %s3433_s1 = scalar_lea.vmem %s60_s20, 256  ;;  %p3438_p12 = scmp.lt.s32.totalorder %s60_s20, %s60_s20 }
  0x1e   :  { %p3434_p11 = scmp.ne.s32.totalorder %s60_s20, %s3433_s1  ;;  %p3439_p13 = scmp.lt.s32.totalorder %s3433_s1, %s3433_s1 }
  0x20   :  { %p3440_p0 = por %p3439_p13, %p3438_p12 }
  0x22   :  { %p3441_p1 = pnand %p3440_p0, %p3434_p11 }
  0x24   :  { %3444 = shalt.err (!%p3441_p1)
}
  0x25   :  { %65 = dma.hbm_to_vmem [thread:$0]  %s4173_s4, 256, %s60_s20, [#allocation9], %s3566_s15, %s3566_s15, %s3567_s16  }
  0x26   :  { %s3445_s12 = scalar_lea.hbm %s4169_s0, 128 }
  0x27   :  { %p3446_p2 = scmp.ne.s32.totalorder %s4169_s0, %s3445_s12  ;;  %p3449_p3 = scmp.lt.u32.totalorder %s3445_s12, %s4169_s0 }
  0x29   :  { %p3451_p4 = pnand %p3449_p3, %p3446_p2 }
  0x2b   :  { %3454 = shalt.err (!%p3451_p4)
}
  0x2c   :  { %s3455_s19 = scalar_lea.vmem %s25_s22, 128  ;;  %p3460_p6 = scmp.lt.s32.totalorder %s25_s22, %s25_s22 }
  0x2d   :  { %p3456_p5 = scmp.ne.s32.totalorder %s25_s22, %s3455_s19  ;;  %p3461_p7 = scmp.lt.s32.totalorder %s3455_s19, %s3455_s19 }
  0x2f   :  { %p3462_p8 = por %p3461_p7, %p3460_p6 }
  0x31   :  { %p3463_p9 = pnand %p3462_p8, %p3456_p5 }
  0x33   :  { %3466 = shalt.err (!%p3463_p9)
}
  0x34   :  { %27 = dma.hbm_to_vmem [thread:$0]  %s4169_s0, 128, %s25_s22, [#allocation3]  }
  0x35   :  { %s3570_s21 = smov [#allocation7]   ;;  %s3571_s24 = smov [#allocation10]  }
  0x36   :  { %s47_s23 = sshll.u32 %s3570_s21, 4  ;;  %s71_s25 = sshll.u32 %s3571_s24, 4  ;;  %s48_s23 = int_to_ptr.vmem [resolvable:$true] %s47_s23  ;;  %s72_s25 = int_to_ptr.vmem [resolvable:$true] %s71_s25 }
  0x37   :  { %s3467_s29 = scalar_lea.hbm %s4172_s3, 24576 }
  0x38   :  { %p3468_p10 = scmp.ne.s32.totalorder %s4172_s3, %s3467_s29  ;;  %p3471_p11 = scmp.lt.u32.totalorder %s3467_s29, %s4172_s3 }
  0x3a   :  { %p3473_p12 = pnand %p3471_p11, %p3468_p10 }
  0x3c   :  { %3476 = shalt.err (!%p3473_p12)
}
  0x3d   :  { %s3477_s0 = scalar_lea.vmem %s48_s23, 24576  ;;  %p3482_p0 = scmp.lt.s32.totalorder %s48_s23, %s48_s23 }
  0x3e   :  { %p3478_p13 = scmp.ne.s32.totalorder %s48_s23, %s3477_s0  ;;  %p3483_p1 = scmp.lt.s32.totalorder %s3477_s0, %s3477_s0 }
  0x40   :  { %p3484_p2 = por %p3483_p1, %p3482_p0 }
  0x42   :  { %p3485_p3 = pnand %p3484_p2, %p3478_p13 }
  0x44   :  { %3488 = shalt.err (!%p3485_p3)
}
  0x45   :  { %53 = dma.hbm_to_vmem [thread:$0]  %s4172_s3, 24576, %s48_s23, [#allocation6], %s3566_s15, %s3566_s15, %s3567_s16  }
  0x46   :  { %s3489_s13 = scalar_lea.hbm %s4174_s5, 8192 }
  0x47   :  { %p3490_p4 = scmp.ne.s32.totalorder %s4174_s5, %s3489_s13  ;;  %p3493_p5 = scmp.lt.u32.totalorder %s3489_s13, %s4174_s5 }
  0x49   :  { %p3495_p6 = pnand %p3493_p5, %p3490_p4 }
  0x4b   :  { %3498 = shalt.err (!%p3495_p6)
}
  0x4c   :  { %s3499_s4 = scalar_lea.vmem %s72_s25, 8192  ;;  %p3504_p8 = scmp.lt.s32.totalorder %s72_s25, %s72_s25 }
  0x4d   :  { %p3500_p7 = scmp.ne.s32.totalorder %s72_s25, %s3499_s4  ;;  %p3505_p9 = scmp.lt.s32.totalorder %s3499_s4, %s3499_s4 }
  0x4f   :  { %p3506_p10 = por %p3505_p9, %p3504_p8 }
  0x51   :  { %p3507_p11 = pnand %p3506_p10, %p3500_p7 }
  0x53   :  { %3510 = shalt.err (!%p3507_p11)
}
  0x54   :  { %s3572_s3 = smov 512   ;;  %s3573_s20 = smov 32  }
  0x55   :  { %77 = dma.hbm_to_vmem [thread:$0]  %s4174_s5, 8192, %s72_s25, [#allocation9], %s3572_s3, %s3572_s3, %s3573_s20  }
  0x56   :  { %s3574_s24 = smov [#allocation11]   ;;  %s3511_s30 = scalar_lea.hbm %s4176_s7, 8192 }
  0x57   :  { %s85_s26 = sshll.u32 %s3574_s24, 4  ;;  %p3512_p12 = scmp.ne.s32.totalorder %s4176_s7, %s3511_s30  ;;  %s86_s26 = int_to_ptr.vmem [resolvable:$true] %s85_s26 }
  0x58   :  { %p3515_p13 = scmp.lt.u32.totalorder %s3511_s30, %s4176_s7 }
  0x5a   :  { %p3517_p0 = pnand %p3515_p13, %p3512_p12 }
  0x5c   :  { %3520 = shalt.err (!%p3517_p0)
}
  0x5d   :  { %s3521_s22 = scalar_lea.vmem %s86_s26, 8192  ;;  %p3526_p2 = scmp.lt.s32.totalorder %s86_s26, %s86_s26 }
  0x5e   :  { %p3522_p1 = scmp.ne.s32.totalorder %s86_s26, %s3521_s22  ;;  %p3527_p3 = scmp.lt.s32.totalorder %s3521_s22, %s3521_s22 }
  0x60   :  { %p3528_p4 = por %p3527_p3, %p3526_p2 }
  0x62   :  { %p3529_p5 = pnand %p3528_p4, %p3522_p1 }
  0x64   :  { %3532 = shalt.err (!%p3529_p5)
}
  0x65   :  { %91 = dma.hbm_to_vmem [thread:$0]  %s4176_s7, 8192, %s86_s26, [#allocation12], %s3566_s15, %s3566_s15, %s3567_s16  }
  0x66   :  { %3555 = dma.done.wait [#allocation3], 128  }
  0x67   :  { %3556 = vsyncadd [#allocation3], 4294967168 }
  0x68   :  { %3557 = dma.done.wait [#allocation6], 25088  }
  0x69   :  { %3558 = vsyncadd [#allocation6], 4294942208 }
  0x6a   :  { %3559 = dma.done.wait [#allocation9], 8448  }
  0x6b   :  { %3560 = vsyncadd [#allocation9], 4294958848 }
  0x6c   :  { %3561 = dma.done.wait [#allocation12], 8192  }
  0x6d   :  { %3562 = vsyncadd [#allocation12], 4294959104  ;;  %v3575_v0 = vmov 0.0|0.0   ;;  %vm3576_vm0 = vmmov 0   ;;  %v3577_v1 = vmov 0.0   ;;  %v111_v2 = vld [vmem:[#allocation5] sm:$0xff] }
  0x6e   :  { %2927 = vmatprep.subr.bf16.mxu0 %v3575_v0  ;;  %2504 = vmatprep.mubr.msk.f32.mxu0 %vm3576_vm0, %v3577_v1  ;;  %v112_v3 = vld [vmem:[#allocation5 + $0x8] sm:$0xff]  ;;  %v113_v4 = vld [vmem:[#allocation5 + $0x10] sm:$0xff]  ;;  %v114_v6 = vld [vmem:[#allocation5 + $0x18] sm:$0xff]  ;;  %vm122_vm1 = vcmask 261120  }
  0x6f   :  { %2933 = vmatprep.subr.bf16.mxu1 %v3575_v0  ;;  %2539 = vmatprep.mubr.msk.f32.mxu1 %vm3576_vm0, %v3577_v1  ;;  %v2928_v5 = vpack.c.bf16 %v112_v3, %v111_v2  ;;  %v197_v7 = vld [vmem:[#allocation7] sm:$0xff]  ;;  %v198_v8 = vld [vmem:[#allocation7 + $0x8] sm:$0xff]  ;;  %v199_v9 = vld [vmem:[#allocation7 + $0x10] sm:$0xff]  ;;  %v2931_v11 = vpack.c.bf16 %v114_v6, %v113_v4 }
  0x70   :  { %v200_v10 = vld [vmem:[#allocation7 + $0x18] sm:$0xff]  ;;  %v2934_v12 = vpack.c.bf16 %v198_v8, %v197_v7  ;;  %v201_v14 = vld [vmem:[#allocation7 + $0x20] sm:$0xff]  ;;  %v202_v15 = vld [vmem:[#allocation7 + $0x28] sm:$0xff] }
  0x71   :  { %2929 = vmatpush3.bf16.msra.mxu0 %v2928_v5  ;;  %v2937_v13 = vpack.c.bf16 %v200_v10, %v199_v9  ;;  %v110_v16 = vld [vmem:[#allocation2] sm:$0xff]  ;;  %v2940_v17 = vpack.c.bf16 %v202_v15, %v201_v14  ;;  %v203_v18 = vld [vmem:[#allocation7 + $0x30] sm:$0xff]  ;;  %v205_v21 = vld [vmem:[#allocation7 + $0x40] sm:$0xff] }
  0x72   :  { %2930 = vmatprep.subr.bf16.mxu0 %v3575_v0  ;;  %2935 = vmatpush3.bf16.msra.mxu1 %v2934_v12  ;;  %v204_v19 = vld [vmem:[#allocation7 + $0x38] sm:$0xff]  ;;  %v206_v22 = vld [vmem:[#allocation7 + $0x48] sm:$0xff]  ;;  %v207_v24 = vld [vmem:[#allocation7 + $0x50] sm:$0xff] }
  0x73   :  { %2936 = vmatprep.subr.bf16.mxu1 %v3575_v0  ;;  %v2943_v20 = vpack.c.bf16 %v204_v19, %v203_v18  ;;  %v2946_v23 = vpack.c.bf16 %v206_v22, %v205_v21  ;;  %v208_v25 = vld [vmem:[#allocation7 + $0x58] sm:$0xff]  ;;  %v209_v27 = vld [vmem:[#allocation7 + $0x60] sm:$0xff]  ;;  %v210_v28 = vld [vmem:[#allocation7 + $0x68] sm:$0xff] }
  0x74   :  { %v2949_v26 = vpack.c.bf16 %v208_v25, %v207_v24  ;;  %v2952_v29 = vpack.c.bf16 %v210_v28, %v209_v27  ;;  %v211_v30 = vld [vmem:[#allocation7 + $0x70] sm:$0xff]  ;;  %v212_v31 = vld [vmem:[#allocation7 + $0x78] sm:$0xff]  ;;  %v291_v33 = vld [vmem:[#allocation7 + $0x80] sm:$0xff] }
  0x75   :  { %2932 = vmatpush3.bf16.msra.mxu0 %v2931_v11  ;;  %v2955_v32 = vpack.c.bf16 %v212_v31, %v211_v30  ;;  %v292_v34 = vld [vmem:[#allocation7 + $0x88] sm:$0xff]  ;;  %v293_v35 = vld [vmem:[#allocation7 + $0x90] sm:$0xff]  ;;  %v294_v37 = vld [vmem:[#allocation7 + $0x98] sm:$0xff] }
  0x76   :  { %2957 = vmatprep.subr.bf16.mxu0 %v3575_v0  ;;  %2938 = vmatpush3.bf16.msra.mxu1 %v2937_v13  ;;  %v2958_v36 = vpack.c.bf16 %v292_v34, %v291_v33  ;;  %v2961_v38 = vpack.c.bf16 %v294_v37, %v293_v35  ;;  %v295_v39 = vld [vmem:[#allocation7 + $0xa0] sm:$0xff]  ;;  %v296_v40 = vld [vmem:[#allocation7 + $0xa8] sm:$0xff]  ;;  %v297_v42 = vld [vmem:[#allocation7 + $0xb0] sm:$0xff] }
  0x77   :  { %2939 = vmatprep.subr.bf16.mxu1 %v3575_v0  ;;  %v2964_v41 = vpack.c.bf16 %v296_v40, %v295_v39  ;;  %v298_v43 = vld [vmem:[#allocation7 + $0xb8] sm:$0xff]  ;;  %v299_v45 = vld [vmem:[#allocation7 + $0xc0] sm:$0xff]  ;;  %v300_v46 = vld [vmem:[#allocation7 + $0xc8] sm:$0xff] }
  0x78   :  { %2505 = vmatmul.mubr.msk.f32.vlgmr.msra.gmra.mrb[0].mxu0 %vm122_vm1, %v110_v16  ;;  %v2967_v44 = vpack.c.bf16 %v298_v43, %v297_v42  ;;  %v2970_v47 = vpack.c.bf16 %v300_v46, %v299_v45  ;;  %v301_v48 = vld [vmem:[#allocation7 + $0xd0] sm:$0xff]  ;;  %v302_v49 = vld [vmem:[#allocation7 + $0xd8] sm:$0xff]  ;;  %v303_v56 = vld [vmem:[#allocation7 + $0xe0] sm:$0xff] }
  0x79   :  { %2574 = vmatprep.mubr.msk.f32.mxu0 %vm3576_vm0, %v3577_v1  ;;  %2959 = vmatpush3.bf16.msra.mxu0 %v2958_v36  ;;  %v2973_v50 = vpack.c.bf16 %v302_v49, %v301_v48  ;;  %v2187_v51 = vld [vmem:[%s4171_s2] ss:$0 sm:$0xff]  ;;  %v304_v57 = vld [vmem:[#allocation7 + $0xe8] sm:$0xff]  ;;  %v305_v59 = vld [vmem:[#allocation7 + $0xf0] sm:$0xff] }
  0x7a   :  { %2941 = vmatpush3.bf16.msra.mxu1 %v2940_v17  ;;  %2960 = vmatprep.subr.bf16.mxu0 %v3575_v0  ;;  %v2976_v58 = vpack.c.bf16 %v304_v57, %v303_v56  ;;  %v306_v60 = vld [vmem:[#allocation7 + $0xf8] sm:$0xff]  ;;  %v385_v62 = vld [vmem:[#allocation7 + $0x100] sm:$0xff]  ;;  %v386_v63 = vld [vmem:[#allocation7 + $0x108] sm:$0xff] }
  0x7b   :  { %2942 = vmatprep.subr.bf16.mxu1 %v3575_v0  ;;  %v2979_v61 = vpack.c.bf16 %v306_v60, %v305_v59  ;;  %v387_v2 = vld [vmem:[#allocation7 + $0x110] sm:$0xff]  ;;  %v2982_v3 = vpack.c.bf16 %v386_v63, %v385_v62  ;;  %v388_v4 = vld [vmem:[#allocation7 + $0x118] sm:$0xff]  ;;  %v389_v6 = vld [vmem:[#allocation7 + $0x120] sm:$0xff] }
  0x7c   :  { %v2985_v5 = vpack.c.bf16 %v388_v4, %v387_v2  ;;  %v390_v7 = vld [vmem:[#allocation7 + $0x128] sm:$0xff]  ;;  %v391_v9 = vld [vmem:[#allocation7 + $0x130] sm:$0xff]  ;;  %v392_v10 = vld [vmem:[#allocation7 + $0x138] sm:$0xff] }
  0x7d   :  { %2962 = vmatpush3.bf16.msra.mxu0 %v2961_v38  ;;  %v2988_v8 = vpack.c.bf16 %v390_v7, %v389_v6  ;;  %v2991_v11 = vpack.c.bf16 %v392_v10, %v391_v9  ;;  %v393_v12 = vld [vmem:[#allocation7 + $0x140] sm:$0xff]  ;;  %v394_v13 = vld [vmem:[#allocation7 + $0x148] sm:$0xff]  ;;  %v395_v15 = vld [vmem:[#allocation7 + $0x150] sm:$0xff] }
  0x7e   :  { %2944 = vmatpush3.bf16.msra.mxu1 %v2943_v20  ;;  %2963 = vmatprep.subr.bf16.mxu0 %v3575_v0  ;;  %v2994_v14 = vpack.c.bf16 %v394_v13, %v393_v12  ;;  %v396_v16 = vld [vmem:[#allocation7 + $0x158] sm:$0xff]  ;;  %v2189_v18 = vld [vmem:[#allocation8] ss:$0 sm:$0xff]  ;;  %v398_v25 = vld [vmem:[#allocation7 + $0x168] sm:$0xff] }
  0x7f   :  { %2945 = vmatprep.subr.bf16.mxu1 %v3575_v0  ;;  %v2997_v17 = vpack.c.bf16 %v396_v16, %v395_v15  ;;  %v397_v24 = vld [vmem:[#allocation7 + $0x160] sm:$0xff]  ;;  %v399_v27 = vld [vmem:[#allocation7 + $0x170] sm:$0xff]  ;;  %v400_v28 = vld [vmem:[#allocation7 + $0x178] sm:$0xff] }
  0x80   :  { %v479_v30 = vld [vmem:[#allocation7 + $0x180] sm:$0xff]  ;;  %v480_v31 = vld [vmem:[#allocation7 + $0x188] sm:$0xff]  ;;  %v482_v34 = vld [vmem:[#allocation7 + $0x198] sm:$0xff] }
  0x81   :  { %2965 = vmatpush3.bf16.msra.mxu0 %v2964_v41  ;;  %v3006_v33 = vpack.c.bf16 %v480_v31, %v479_v30  ;;  %v483_v36 = vld [vmem:[#allocation7 + $0x1a0] sm:$0xff]  ;;  %v484_v37 = vld [vmem:[#allocation7 + $0x1a8] sm:$0xff]  ;;  %v485_v39 = vld [vmem:[#allocation7 + $0x1b0] sm:$0xff] }
  0x82   :  { %2947 = vmatpush3.bf16.msra.mxu1 %v2946_v23  ;;  %2966 = vmatprep.subr.bf16.mxu0 %v3575_v0  ;;  %v3012_v38 = vpack.c.bf16 %v484_v37, %v483_v36  ;;  %v486_v40 = vld [vmem:[#allocation7 + $0x1b8] sm:$0xff]  ;;  %v487_v42 = vld [vmem:[#allocation7 + $0x1c0] sm:$0xff]  ;;  %v488_v43 = vld [vmem:[#allocation7 + $0x1c8] sm:$0xff] }
  0x83   :  { %2948 = vmatprep.subr.bf16.mxu1 %v3575_v0  ;;  %v3015_v41 = vpack.c.bf16 %v486_v40, %v485_v39  ;;  %v489_v45 = vld [vmem:[#allocation7 + $0x1d0] sm:$0xff]  ;;  %v490_v46 = vld [vmem:[#allocation7 + $0x1d8] sm:$0xff]  ;;  %v2190_v48 = vld [vmem:[#allocation8 + $0x1] ss:$0 sm:$0xff] }
  0x84   :  { %v493_v57 = vld [vmem:[#allocation7 + $0x1f0] sm:$0xff]  ;;  %v573_v60 = vld [vmem:[#allocation7 + $0x200] sm:$0xff]  ;;  %v576_v2 = vld [vmem:[#allocation7 + $0x218] sm:$0xff] }
  0x85   :  { %2968 = vmatpush3.bf16.msra.mxu0 %v2967_v44  ;;  %v3018_v44 = vpack.c.bf16 %v488_v43, %v487_v42  ;;  %v575_v62 = vld [vmem:[#allocation7 + $0x210] sm:$0xff]  ;;  %v577_v4 = vld [vmem:[#allocation7 + $0x220] sm:$0xff] }
  0x86   :  { %2950 = vmatpush3.bf16.msra.mxu1 %v2949_v26  ;;  %2969 = vmatprep.subr.bf16.mxu0 %v3575_v0  ;;  %v3000_v26 = vpack.c.bf16 %v398_v25, %v397_v24  ;;  %v579_v7 = vld [vmem:[#allocation7 + $0x230] sm:$0xff]  ;;  %v581_v10 = vld [vmem:[#allocation7 + $0x240] sm:$0xff] }
  0x87   :  { %2951 = vmatprep.subr.bf16.mxu1 %v3575_v0  ;;  %v583_v13 = vld [vmem:[#allocation7 + $0x250] sm:$0xff]  ;;  %v2191_v16 = vld [vmem:[#allocation8 + $0x2] ss:$0 sm:$0xff] }
  0x88   :  { %v587_v25 = vld [vmem:[#allocation7 + $0x270] sm:$0xff]  ;;  %v675_v40 = vld [vmem:[#allocation7 + $0x2c0] sm:$0xff] }
  0x89   :  { %2971 = vmatpush3.bf16.msra.mxu0 %v2970_v47  ;;  %v3021_v47 = vpack.c.bf16 %v490_v46, %v489_v45  ;;  %v669_v30 = vld [vmem:[#allocation7 + $0x290] sm:$0xff]  ;;  %v2192_v46 = vld [vmem:[#allocation8 + $0x3] ss:$0 sm:$0xff] }
  0x8a   :  { %2953 = vmatpush3.bf16.msra.mxu1 %v2952_v29  ;;  %2972 = vmatprep.subr.bf16.mxu0 %v3575_v0  ;;  %v3003_v29 = vpack.c.bf16 %v400_v28, %v399_v27  ;;  %v667_v28 = vld [vmem:[#allocation7 + $0x280] sm:$0xff]  ;;  %v673_v37 = vld [vmem:[#allocation7 + $0x2b0] sm:$0xff] }
  0x8b   :  { %2954 = vmatprep.subr.bf16.mxu1 %v3575_v0  ;;  %v677_v43 = vld [vmem:[#allocation7 + $0x2d0] sm:$0xff] }
  0x8d   :  { %2974 = vmatpush3.bf16.msra.mxu0 %v2973_v50 }
  0x8e   :  { %2956 = vmatpush3.bf16.msra.mxu1 %v2955_v32  ;;  %2975 = vmatprep.subr.bf16.mxu0 %v3575_v0  ;;  %v481_v32 = vld [vmem:[#allocation7 + $0x190] sm:$0xff] }
  0x8f   :  { %2981 = vmatprep.subr.bf16.mxu1 %v3575_v0  ;;  %v3009_v35 = vpack.c.bf16 %v482_v34, %v481_v32  ;;  %v670_v32 = vld [vmem:[#allocation7 + $0x298] sm:$0xff]  ;;  %v671_v34 = vld [vmem:[#allocation7 + $0x2a0] sm:$0xff] }
  0x91   :  { %2977 = vmatpush3.bf16.msra.mxu0 %v2976_v58  ;;  %v494_v58 = vld [vmem:[#allocation7 + $0x1f8] sm:$0xff] }
  0x92   :  { %2978 = vmatprep.subr.bf16.mxu0 %v3575_v0  ;;  %v3027_v59 = vpack.c.bf16 %v494_v58, %v493_v57  ;;  %v761_v58 = vld [vmem:[#allocation7 + $0x300] sm:$0xff] }
  0x95   :  { %2980 = vmatpush3.bf16.msra.mxu0 %v2979_v61  ;;  %v574_v61 = vld [vmem:[#allocation7 + $0x208] sm:$0xff] }
  0x96   :  { %3005 = vmatprep.subr.bf16.mxu0 %v3575_v0  ;;  %v3030_v63 = vpack.c.bf16 %v574_v61, %v573_v60  ;;  %v763_v60 = vld [vmem:[#allocation7 + $0x310] sm:$0xff] }
 0x14b   :  { %v192_v52 = vpop.f32.mrb[0].mxu0 }
 0x14c   :  { %v193_v53 = vadd.f32 %v2187_v51, %v192_v52  ;;  %v2506_v54 = vpop.f32.mrb[1].mxu0 }
 0x14d   :  { %v491_v54 = vld [vmem:[#allocation7 + $0x1e0] sm:$0xff] }
 0x14e   :  { %v196_v55 = vmax.f32 %v193_v53, 0.0 }
 0x150   :  { %2540 = vmatmul.mubr.f32.vlgmr.msra.gmra.mrb[0].mxu1 %v196_v55 }
 0x151   :  { %2609 = vmatprep.mubr.msk.f32.mxu1 %vm3576_vm0, %v3577_v1  ;;  %2983 = vmatpush3.bf16.msra.mxu1 %v2982_v3  ;;  %v3033_v3 = vpack.c.bf16 %v576_v2, %v575_v62  ;;  %v764_v62 = vld [vmem:[#allocation7 + $0x318] sm:$0xff]  ;;  %v765_v2 = vld [vmem:[#allocation7 + $0x320] sm:$0xff] }
 0x152   :  { %2984 = vmatprep.subr.bf16.mxu1 %v3575_v0 }
 0x155   :  { %2986 = vmatpush3.bf16.msra.mxu1 %v2985_v5  ;;  %v578_v5 = vld [vmem:[#allocation7 + $0x228] sm:$0xff] }
 0x156   :  { %2987 = vmatprep.subr.bf16.mxu1 %v3575_v0  ;;  %v3036_v6 = vpack.c.bf16 %v578_v5, %v577_v4  ;;  %v767_v5 = vld [vmem:[#allocation7 + $0x330] sm:$0xff] }
 0x159   :  { %2989 = vmatpush3.bf16.msra.mxu1 %v2988_v8  ;;  %v580_v8 = vld [vmem:[#allocation7 + $0x238] sm:$0xff] }
 0x15a   :  { %2990 = vmatprep.subr.bf16.mxu1 %v3575_v0  ;;  %v3039_v9 = vpack.c.bf16 %v580_v8, %v579_v7  ;;  %v769_v8 = vld [vmem:[#allocation7 + $0x340] sm:$0xff] }
 0x15d   :  { %2992 = vmatpush3.bf16.msra.mxu1 %v2991_v11  ;;  %v582_v11 = vld [vmem:[#allocation7 + $0x248] sm:$0xff] }
 0x15e   :  { %2993 = vmatprep.subr.bf16.mxu1 %v3575_v0  ;;  %v3042_v12 = vpack.c.bf16 %v582_v11, %v581_v10  ;;  %v771_v11 = vld [vmem:[#allocation7 + $0x350] sm:$0xff] }
 0x161   :  { %2995 = vmatpush3.bf16.msra.mxu1 %v2994_v14  ;;  %v584_v14 = vld [vmem:[#allocation7 + $0x258] sm:$0xff] }
 0x162   :  { %2996 = vmatprep.subr.bf16.mxu1 %v3575_v0  ;;  %v3045_v15 = vpack.c.bf16 %v584_v14, %v583_v13  ;;  %v2193_v14 = vld [vmem:[#allocation8 + $0x4] ss:$0 sm:$0xff] }
 0x165   :  { %2998 = vmatpush3.bf16.msra.mxu1 %v2997_v17 }
 0x166   :  { %2999 = vmatprep.subr.bf16.mxu1 %v3575_v0 }
 0x169   :  { %3001 = vmatpush3.bf16.msra.mxu1 %v3000_v26  ;;  %v588_v26 = vld [vmem:[#allocation7 + $0x278] sm:$0xff] }
 0x16a   :  { %3002 = vmatprep.subr.bf16.mxu1 %v3575_v0  ;;  %v3051_v27 = vpack.c.bf16 %v588_v26, %v587_v25  ;;  %v855_v26 = vld [vmem:[#allocation7 + $0x380] sm:$0xff] }
 0x16d   :  { %3004 = vmatpush3.bf16.msra.mxu1 %v3003_v29  ;;  %v668_v29 = vld [vmem:[#allocation7 + $0x288] sm:$0xff] }
 0x16e   :  { %3029 = vmatprep.subr.bf16.mxu1 %v3575_v0  ;;  %v3054_v31 = vpack.c.bf16 %v668_v29, %v667_v28  ;;  %v857_v28 = vld [vmem:[#allocation7 + $0x390] sm:$0xff] }
 0x223   :  { %v284_v19 = vpop.f32.mrb[0].mxu1 }
 0x224   :  { %v285_v20 = vadd.f32 %v2189_v18, %v284_v19  ;;  %v2541_v21 = vpop.f32.mrb[1].mxu1 }
 0x226   :  { %v288_v22 = vmax.f32 %v285_v20, 0.0 }
 0x228   :  { %v289_v23 = vadd.f32 %v288_v22, %v196_v55  ;;  %v492_v55 = vld [vmem:[#allocation7 + $0x1e8] sm:$0xff]  ;;  %v585_v22 = vld [vmem:[#allocation7 + $0x260] sm:$0xff] }
 0x229   :  { %v3024_v56 = vpack.c.bf16 %v492_v55, %v491_v54  ;;  %v681_v55 = vld [vmem:[#allocation7 + $0x2f0] sm:$0xff] }
 0x22a   :  { %2575 = vmatmul.mubr.f32.vlgmr.msra.gmra.mrb[2].mxu0 %v289_v23 }
 0x22b   :  { %2644 = vmatprep.mubr.msk.f32.mxu0 %vm3576_vm0, %v3577_v1  ;;  %3007 = vmatpush3.bf16.msra.mxu0 %v3006_v33  ;;  %v3057_v33 = vpack.c.bf16 %v670_v32, %v669_v30  ;;  %v858_v30 = vld [vmem:[#allocation7 + $0x398] sm:$0xff]  ;;  %v859_v32 = vld [vmem:[#allocation7 + $0x3a0] sm:$0xff] }
 0x22c   :  { %3008 = vmatprep.subr.bf16.mxu0 %v3575_v0 }
 0x22f   :  { %3010 = vmatpush3.bf16.msra.mxu0 %v3009_v35  ;;  %v672_v35 = vld [vmem:[#allocation7 + $0x2a8] sm:$0xff] }
 0x230   :  { %3011 = vmatprep.subr.bf16.mxu0 %v3575_v0  ;;  %v3060_v36 = vpack.c.bf16 %v672_v35, %v671_v34  ;;  %v861_v35 = vld [vmem:[#allocation7 + $0x3b0] sm:$0xff] }
 0x233   :  { %3013 = vmatpush3.bf16.msra.mxu0 %v3012_v38  ;;  %v674_v38 = vld [vmem:[#allocation7 + $0x2b8] sm:$0xff] }
 0x234   :  { %3014 = vmatprep.subr.bf16.mxu0 %v3575_v0  ;;  %v3063_v39 = vpack.c.bf16 %v674_v38, %v673_v37  ;;  %v863_v38 = vld [vmem:[#allocation7 + $0x3c0] sm:$0xff] }
 0x237   :  { %3016 = vmatpush3.bf16.msra.mxu0 %v3015_v41  ;;  %v676_v41 = vld [vmem:[#allocation7 + $0x2c8] sm:$0xff] }
 0x238   :  { %3017 = vmatprep.subr.bf16.mxu0 %v3575_v0  ;;  %v3066_v42 = vpack.c.bf16 %v676_v41, %v675_v40  ;;  %v865_v41 = vld [vmem:[#allocation7 + $0x3d0] sm:$0xff] }
 0x23b   :  { %3019 = vmatpush3.bf16.msra.mxu0 %v3018_v44  ;;  %v678_v44 = vld [vmem:[#allocation7 + $0x2d8] sm:$0xff] }
 0x23c   :  { %3020 = vmatprep.subr.bf16.mxu0 %v3575_v0  ;;  %v3069_v45 = vpack.c.bf16 %v678_v44, %v677_v43  ;;  %v2194_v44 = vld [vmem:[#allocation8 + $0x5] ss:$0 sm:$0xff] }
 0x23f   :  { %3022 = vmatpush3.bf16.msra.mxu0 %v3021_v47 }
 0x240   :  { %3023 = vmatprep.subr.bf16.mxu0 %v3575_v0 }
 0x243   :  { %3025 = vmatpush3.bf16.msra.mxu0 %v3024_v56  ;;  %v682_v56 = vld [vmem:[#allocation7 + $0x2f8] sm:$0xff] }
 0x244   :  { %3026 = vmatprep.subr.bf16.mxu0 %v3575_v0  ;;  %v3075_v57 = vpack.c.bf16 %v682_v56, %v681_v55  ;;  %v949_v56 = vld [vmem:[#allocation7 + $0x400] sm:$0xff] }
 0x247   :  { %3028 = vmatpush3.bf16.msra.mxu0 %v3027_v59  ;;  %v762_v59 = vld [vmem:[#allocation7 + $0x308] sm:$0xff] }
 0x248   :  { %3053 = vmatprep.subr.bf16.mxu0 %v3575_v0  ;;  %v3078_v61 = vpack.c.bf16 %v762_v59, %v761_v58  ;;  %v951_v58 = vld [vmem:[#allocation7 + $0x410] sm:$0xff] }
 0x2fd   :  { %v378_v49 = vpop.f32.mrb[2].mxu0 }
 0x2fe   :  { %v379_v50 = vadd.f32 %v2190_v48, %v378_v49  ;;  %v2576_v51 = vpop.f32.mrb[3].mxu0 }
 0x300   :  { %v382_v52 = vmax.f32 %v379_v50, 0.0 }
 0x302   :  { %v383_v53 = vadd.f32 %v382_v52, %v289_v23  ;;  %v586_v23 = vld [vmem:[#allocation7 + $0x268] sm:$0xff]  ;;  %v679_v52 = vld [vmem:[#allocation7 + $0x2e0] sm:$0xff] }
 0x303   :  { %v3048_v24 = vpack.c.bf16 %v586_v23, %v585_v22  ;;  %v775_v23 = vld [vmem:[#allocation7 + $0x370] sm:$0xff] }
 0x304   :  { %2610 = vmatmul.mubr.f32.vlgmr.msra.gmra.mrb[2].mxu1 %v383_v53 }
 0x305   :  { %2679 = vmatprep.mubr.msk.f32.mxu1 %vm3576_vm0, %v3577_v1  ;;  %3031 = vmatpush3.bf16.msra.mxu1 %v3030_v63  ;;  %v3081_v63 = vpack.c.bf16 %v764_v62, %v763_v60  ;;  %v952_v60 = vld [vmem:[#allocation7 + $0x418] sm:$0xff]  ;;  %v953_v62 = vld [vmem:[#allocation7 + $0x420] sm:$0xff] }
 0x306   :  { %3032 = vmatprep.subr.bf16.mxu1 %v3575_v0 }
 0x309   :  { %3034 = vmatpush3.bf16.msra.mxu1 %v3033_v3  ;;  %v766_v3 = vld [vmem:[#allocation7 + $0x328] sm:$0xff] }
 0x30a   :  { %3035 = vmatprep.subr.bf16.mxu1 %v3575_v0  ;;  %v3084_v4 = vpack.c.bf16 %v766_v3, %v765_v2  ;;  %v955_v3 = vld [vmem:[#allocation7 + $0x430] sm:$0xff] }
 0x30d   :  { %3037 = vmatpush3.bf16.msra.mxu1 %v3036_v6  ;;  %v768_v6 = vld [vmem:[#allocation7 + $0x338] sm:$0xff] }
 0x30e   :  { %3038 = vmatprep.subr.bf16.mxu1 %v3575_v0  ;;  %v3087_v7 = vpack.c.bf16 %v768_v6, %v767_v5  ;;  %v957_v6 = vld [vmem:[#allocation7 + $0x440] sm:$0xff] }
 0x311   :  { %3040 = vmatpush3.bf16.msra.mxu1 %v3039_v9  ;;  %v770_v9 = vld [vmem:[#allocation7 + $0x348] sm:$0xff] }
 0x312   :  { %3041 = vmatprep.subr.bf16.mxu1 %v3575_v0  ;;  %v3090_v10 = vpack.c.bf16 %v770_v9, %v769_v8  ;;  %v959_v9 = vld [vmem:[#allocation7 + $0x450] sm:$0xff] }
 0x315   :  { %3043 = vmatpush3.bf16.msra.mxu1 %v3042_v12  ;;  %v772_v12 = vld [vmem:[#allocation7 + $0x358] sm:$0xff] }
 0x316   :  { %3044 = vmatprep.subr.bf16.mxu1 %v3575_v0  ;;  %v3093_v13 = vpack.c.bf16 %v772_v12, %v771_v11  ;;  %v2195_v12 = vld [vmem:[#allocation8 + $0x6] ss:$0 sm:$0xff] }
 0x319   :  { %3046 = vmatpush3.bf16.msra.mxu1 %v3045_v15 }
 0x31a   :  { %3047 = vmatprep.subr.bf16.mxu1 %v3575_v0 }
 0x31d   :  { %3049 = vmatpush3.bf16.msra.mxu1 %v3048_v24  ;;  %v776_v24 = vld [vmem:[#allocation7 + $0x378] sm:$0xff] }
 0x31e   :  { %3050 = vmatprep.subr.bf16.mxu1 %v3575_v0  ;;  %v3099_v25 = vpack.c.bf16 %v776_v24, %v775_v23  ;;  %v1043_v24 = vld [vmem:[#allocation7 + $0x480] sm:$0xff] }
 0x321   :  { %3052 = vmatpush3.bf16.msra.mxu1 %v3051_v27  ;;  %v856_v27 = vld [vmem:[#allocation7 + $0x388] sm:$0xff] }
 0x322   :  { %3077 = vmatprep.subr.bf16.mxu1 %v3575_v0  ;;  %v3102_v29 = vpack.c.bf16 %v856_v27, %v855_v26  ;;  %v1045_v26 = vld [vmem:[#allocation7 + $0x490] sm:$0xff] }
 0x3d7   :  { %v472_v17 = vpop.f32.mrb[2].mxu1 }
 0x3d8   :  { %v473_v18 = vadd.f32 %v2191_v16, %v472_v17  ;;  %v2611_v19 = vpop.f32.mrb[3].mxu1 }
 0x3da   :  { %v476_v20 = vmax.f32 %v473_v18, 0.0 }
 0x3dc   :  { %v477_v21 = vadd.f32 %v476_v20, %v383_v53  ;;  %v680_v53 = vld [vmem:[#allocation7 + $0x2e8] sm:$0xff]  ;;  %v773_v20 = vld [vmem:[#allocation7 + $0x360] sm:$0xff] }
 0x3dd   :  { %v3072_v54 = vpack.c.bf16 %v680_v53, %v679_v52  ;;  %v869_v53 = vld [vmem:[#allocation7 + $0x3f0] sm:$0xff] }
 0x3de   :  { %2645 = vmatmul.mubr.f32.vlgmr.msra.gmra.mrb[4].mxu0 %v477_v21 }
 0x3df   :  { %2714 = vmatprep.mubr.msk.f32.mxu0 %vm3576_vm0, %v3577_v1  ;;  %3055 = vmatpush3.bf16.msra.mxu0 %v3054_v31  ;;  %v3105_v31 = vpack.c.bf16 %v858_v30, %v857_v28  ;;  %v1046_v28 = vld [vmem:[#allocation7 + $0x498] sm:$0xff]  ;;  %v1047_v30 = vld [vmem:[#allocation7 + $0x4a0] sm:$0xff] }
 0x3e0   :  { %3056 = vmatprep.subr.bf16.mxu0 %v3575_v0 }
 0x3e3   :  { %3058 = vmatpush3.bf16.msra.mxu0 %v3057_v33  ;;  %v860_v33 = vld [vmem:[#allocation7 + $0x3a8] sm:$0xff] }
 0x3e4   :  { %3059 = vmatprep.subr.bf16.mxu0 %v3575_v0  ;;  %v3108_v34 = vpack.c.bf16 %v860_v33, %v859_v32  ;;  %v1049_v33 = vld [vmem:[#allocation7 + $0x4b0] sm:$0xff] }
 0x3e7   :  { %3061 = vmatpush3.bf16.msra.mxu0 %v3060_v36  ;;  %v862_v36 = vld [vmem:[#allocation7 + $0x3b8] sm:$0xff] }
 0x3e8   :  { %3062 = vmatprep.subr.bf16.mxu0 %v3575_v0  ;;  %v3111_v37 = vpack.c.bf16 %v862_v36, %v861_v35  ;;  %v1051_v36 = vld [vmem:[#allocation7 + $0x4c0] sm:$0xff] }
 0x3eb   :  { %3064 = vmatpush3.bf16.msra.mxu0 %v3063_v39  ;;  %v864_v39 = vld [vmem:[#allocation7 + $0x3c8] sm:$0xff] }
 0x3ec   :  { %3065 = vmatprep.subr.bf16.mxu0 %v3575_v0  ;;  %v3114_v40 = vpack.c.bf16 %v864_v39, %v863_v38  ;;  %v1053_v39 = vld [vmem:[#allocation7 + $0x4d0] sm:$0xff] }
 0x3ef   :  { %3067 = vmatpush3.bf16.msra.mxu0 %v3066_v42  ;;  %v866_v42 = vld [vmem:[#allocation7 + $0x3d8] sm:$0xff] }
 0x3f0   :  { %3068 = vmatprep.subr.bf16.mxu0 %v3575_v0  ;;  %v3117_v43 = vpack.c.bf16 %v866_v42, %v865_v41  ;;  %v2196_v42 = vld [vmem:[#allocation8 + $0x7] ss:$0 sm:$0xff] }
 0x3f3   :  { %3070 = vmatpush3.bf16.msra.mxu0 %v3069_v45 }
 0x3f4   :  { %3071 = vmatprep.subr.bf16.mxu0 %v3575_v0 }
 0x3f7   :  { %3073 = vmatpush3.bf16.msra.mxu0 %v3072_v54  ;;  %v870_v54 = vld [vmem:[#allocation7 + $0x3f8] sm:$0xff] }
 0x3f8   :  { %3074 = vmatprep.subr.bf16.mxu0 %v3575_v0  ;;  %v3123_v55 = vpack.c.bf16 %v870_v54, %v869_v53  ;;  %v1137_v54 = vld [vmem:[#allocation7 + $0x500] sm:$0xff] }
 0x3fb   :  { %3076 = vmatpush3.bf16.msra.mxu0 %v3075_v57  ;;  %v950_v57 = vld [vmem:[#allocation7 + $0x408] sm:$0xff] }
 0x3fc   :  { %3101 = vmatprep.subr.bf16.mxu0 %v3575_v0  ;;  %v3126_v59 = vpack.c.bf16 %v950_v57, %v949_v56  ;;  %v1139_v56 = vld [vmem:[#allocation7 + $0x510] sm:$0xff] }
 0x4b1   :  { %v566_v47 = vpop.f32.mrb[4].mxu0 }
 0x4b2   :  { %v567_v48 = vadd.f32 %v2192_v46, %v566_v47  ;;  %v2646_v49 = vpop.f32.mrb[5].mxu0 }
 0x4b4   :  { %v570_v50 = vmax.f32 %v567_v48, 0.0 }
 0x4b6   :  { %v571_v51 = vadd.f32 %v570_v50, %v477_v21  ;;  %v774_v21 = vld [vmem:[#allocation7 + $0x368] sm:$0xff]  ;;  %v867_v50 = vld [vmem:[#allocation7 + $0x3e0] sm:$0xff] }
 0x4b7   :  { %v3096_v22 = vpack.c.bf16 %v774_v21, %v773_v20  ;;  %v963_v21 = vld [vmem:[#allocation7 + $0x470] sm:$0xff] }
 0x4b8   :  { %2680 = vmatmul.mubr.f32.vlgmr.msra.gmra.mrb[4].mxu1 %v571_v51 }
 0x4b9   :  { %2749 = vmatprep.mubr.msk.f32.mxu1 %vm3576_vm0, %v3577_v1  ;;  %3079 = vmatpush3.bf16.msra.mxu1 %v3078_v61  ;;  %v3129_v61 = vpack.c.bf16 %v952_v60, %v951_v58  ;;  %v1140_v58 = vld [vmem:[#allocation7 + $0x518] sm:$0xff]  ;;  %v1141_v60 = vld [vmem:[#allocation7 + $0x520] sm:$0xff] }
 0x4ba   :  { %3080 = vmatprep.subr.bf16.mxu1 %v3575_v0 }
 0x4bd   :  { %3082 = vmatpush3.bf16.msra.mxu1 %v3081_v63  ;;  %v954_v63 = vld [vmem:[#allocation7 + $0x428] sm:$0xff] }
 0x4be   :  { %3083 = vmatprep.subr.bf16.mxu1 %v3575_v0  ;;  %v3132_v2 = vpack.c.bf16 %v954_v63, %v953_v62  ;;  %v1143_v63 = vld [vmem:[#allocation7 + $0x530] sm:$0xff] }
 0x4c1   :  { %3085 = vmatpush3.bf16.msra.mxu1 %v3084_v4  ;;  %v956_v4 = vld [vmem:[#allocation7 + $0x438] sm:$0xff] }
 0x4c2   :  { %3086 = vmatprep.subr.bf16.mxu1 %v3575_v0  ;;  %v3135_v5 = vpack.c.bf16 %v956_v4, %v955_v3  ;;  %v1145_v4 = vld [vmem:[#allocation7 + $0x540] sm:$0xff] }
 0x4c5   :  { %3088 = vmatpush3.bf16.msra.mxu1 %v3087_v7  ;;  %v958_v7 = vld [vmem:[#allocation7 + $0x448] sm:$0xff] }
 0x4c6   :  { %3089 = vmatprep.subr.bf16.mxu1 %v3575_v0  ;;  %v3138_v8 = vpack.c.bf16 %v958_v7, %v957_v6  ;;  %v1147_v7 = vld [vmem:[#allocation7 + $0x550] sm:$0xff] }
 0x4c9   :  { %3091 = vmatpush3.bf16.msra.mxu1 %v3090_v10  ;;  %v960_v10 = vld [vmem:[#allocation7 + $0x458] sm:$0xff] }
 0x4ca   :  { %3092 = vmatprep.subr.bf16.mxu1 %v3575_v0  ;;  %v3141_v11 = vpack.c.bf16 %v960_v10, %v959_v9  ;;  %v2197_v10 = vld [vmem:[#allocation8 + $0x8] ss:$0 sm:$0xff] }
 0x4cd   :  { %3094 = vmatpush3.bf16.msra.mxu1 %v3093_v13 }
 0x4ce   :  { %3095 = vmatprep.subr.bf16.mxu1 %v3575_v0 }
 0x4d1   :  { %3097 = vmatpush3.bf16.msra.mxu1 %v3096_v22  ;;  %v964_v22 = vld [vmem:[#allocation7 + $0x478] sm:$0xff] }
 0x4d2   :  { %3098 = vmatprep.subr.bf16.mxu1 %v3575_v0  ;;  %v3147_v23 = vpack.c.bf16 %v964_v22, %v963_v21  ;;  %v1231_v22 = vld [vmem:[#allocation7 + $0x580] sm:$0xff] }
 0x4d5   :  { %3100 = vmatpush3.bf16.msra.mxu1 %v3099_v25  ;;  %v1044_v25 = vld [vmem:[#allocation7 + $0x488] sm:$0xff] }
 0x4d6   :  { %3125 = vmatprep.subr.bf16.mxu1 %v3575_v0  ;;  %v3150_v27 = vpack.c.bf16 %v1044_v25, %v1043_v24  ;;  %v1233_v24 = vld [vmem:[#allocation7 + $0x590] sm:$0xff] }
 0x58b   :  { %v660_v15 = vpop.f32.mrb[4].mxu1 }
 0x58c   :  { %v661_v16 = vadd.f32 %v2193_v14, %v660_v15  ;;  %v2681_v17 = vpop.f32.mrb[5].mxu1 }
 0x58e   :  { %v664_v18 = vmax.f32 %v661_v16, 0.0 }
 0x590   :  { %v665_v19 = vadd.f32 %v664_v18, %v571_v51  ;;  %v868_v51 = vld [vmem:[#allocation7 + $0x3e8] sm:$0xff]  ;;  %v961_v18 = vld [vmem:[#allocation7 + $0x460] sm:$0xff] }
 0x591   :  { %v3120_v52 = vpack.c.bf16 %v868_v51, %v867_v50  ;;  %v1057_v51 = vld [vmem:[#allocation7 + $0x4f0] sm:$0xff] }
 0x592   :  { %2715 = vmatmul.mubr.f32.vlgmr.msra.gmra.mrb[6].mxu0 %v665_v19 }
 0x593   :  { %2784 = vmatprep.mubr.msk.f32.mxu0 %vm3576_vm0, %v3577_v1  ;;  %3103 = vmatpush3.bf16.msra.mxu0 %v3102_v29  ;;  %v3153_v29 = vpack.c.bf16 %v1046_v28, %v1045_v26  ;;  %v1234_v26 = vld [vmem:[#allocation7 + $0x598] sm:$0xff]  ;;  %v1235_v28 = vld [vmem:[#allocation7 + $0x5a0] sm:$0xff] }
 0x594   :  { %3104 = vmatprep.subr.bf16.mxu0 %v3575_v0 }
 0x597   :  { %3106 = vmatpush3.bf16.msra.mxu0 %v3105_v31  ;;  %v1048_v31 = vld [vmem:[#allocation7 + $0x4a8] sm:$0xff] }
 0x598   :  { %3107 = vmatprep.subr.bf16.mxu0 %v3575_v0  ;;  %v3156_v32 = vpack.c.bf16 %v1048_v31, %v1047_v30  ;;  %v1237_v31 = vld [vmem:[#allocation7 + $0x5b0] sm:$0xff] }
 0x59b   :  { %3109 = vmatpush3.bf16.msra.mxu0 %v3108_v34  ;;  %v1050_v34 = vld [vmem:[#allocation7 + $0x4b8] sm:$0xff] }
 0x59c   :  { %3110 = vmatprep.subr.bf16.mxu0 %v3575_v0  ;;  %v3159_v35 = vpack.c.bf16 %v1050_v34, %v1049_v33  ;;  %v1239_v34 = vld [vmem:[#allocation7 + $0x5c0] sm:$0xff] }
 0x59f   :  { %3112 = vmatpush3.bf16.msra.mxu0 %v3111_v37  ;;  %v1052_v37 = vld [vmem:[#allocation7 + $0x4c8] sm:$0xff] }
 0x5a0   :  { %3113 = vmatprep.subr.bf16.mxu0 %v3575_v0  ;;  %v3162_v38 = vpack.c.bf16 %v1052_v37, %v1051_v36  ;;  %v1241_v37 = vld [vmem:[#allocation7 + $0x5d0] sm:$0xff] }
 0x5a3   :  { %3115 = vmatpush3.bf16.msra.mxu0 %v3114_v40  ;;  %v1054_v40 = vld [vmem:[#allocation7 + $0x4d8] sm:$0xff] }
 0x5a4   :  { %3116 = vmatprep.subr.bf16.mxu0 %v3575_v0  ;;  %v3165_v41 = vpack.c.bf16 %v1054_v40, %v1053_v39  ;;  %v2198_v40 = vld [vmem:[#allocation8 + $0x9] ss:$0 sm:$0xff] }
 0x5a7   :  { %3118 = vmatpush3.bf16.msra.mxu0 %v3117_v43 }
 0x5a8   :  { %3119 = vmatprep.subr.bf16.mxu0 %v3575_v0 }
 0x5ab   :  { %3121 = vmatpush3.bf16.msra.mxu0 %v3120_v52  ;;  %v1058_v52 = vld [vmem:[#allocation7 + $0x4f8] sm:$0xff] }
 0x5ac   :  { %3122 = vmatprep.subr.bf16.mxu0 %v3575_v0  ;;  %v3171_v53 = vpack.c.bf16 %v1058_v52, %v1057_v51  ;;  %v1325_v52 = vld [vmem:[#allocation10 + $0x8] sm:$0xff] }
 0x5af   :  { %3124 = vmatpush3.bf16.msra.mxu0 %v3123_v55  ;;  %v1138_v55 = vld [vmem:[#allocation7 + $0x508] sm:$0xff] }
 0x5b0   :  { %3149 = vmatprep.subr.bf16.mxu0 %v3575_v0  ;;  %v3174_v57 = vpack.c.bf16 %v1138_v55, %v1137_v54  ;;  %v1327_v54 = vld [vmem:[#allocation10 + $0x18] sm:$0xff] }
 0x665   :  { %v754_v45 = vpop.f32.mrb[6].mxu0 }
 0x666   :  { %v755_v46 = vadd.f32 %v2194_v44, %v754_v45  ;;  %v2716_v47 = vpop.f32.mrb[7].mxu0 }
 0x668   :  { %v758_v48 = vmax.f32 %v755_v46, 0.0 }
 0x66a   :  { %v759_v49 = vadd.f32 %v758_v48, %v665_v19  ;;  %v962_v19 = vld [vmem:[#allocation7 + $0x468] sm:$0xff]  ;;  %v1055_v48 = vld [vmem:[#allocation7 + $0x4e0] sm:$0xff] }
 0x66b   :  { %v3144_v20 = vpack.c.bf16 %v962_v19, %v961_v18  ;;  %v1151_v19 = vld [vmem:[#allocation7 + $0x570] sm:$0xff] }
 0x66c   :  { %2750 = vmatmul.mubr.f32.vlgmr.msra.gmra.mrb[6].mxu1 %v759_v49 }
 0x66d   :  { %2819 = vmatprep.mubr.msk.f32.mxu1 %vm3576_vm0, %v3577_v1  ;;  %3127 = vmatpush3.bf16.msra.mxu1 %v3126_v59  ;;  %v3177_v59 = vpack.c.bf16 %v1140_v58, %v1139_v56  ;;  %v1331_v56 = vld [vmem:[#allocation10 + $0x38] sm:$0xff]  ;;  %v1328_v58 = vld [vmem:[#allocation10 + $0x20] sm:$0xff] }
 0x66e   :  { %3128 = vmatprep.subr.bf16.mxu1 %v3575_v0 }
 0x671   :  { %3130 = vmatpush3.bf16.msra.mxu1 %v3129_v61  ;;  %v1142_v61 = vld [vmem:[#allocation7 + $0x528] sm:$0xff] }
 0x672   :  { %3131 = vmatprep.subr.bf16.mxu1 %v3575_v0  ;;  %v3180_v62 = vpack.c.bf16 %v1142_v61, %v1141_v60  ;;  %v1333_v61 = vld [vmem:[#allocation10 + $0x48] sm:$0xff] }
 0x675   :  { %3133 = vmatpush3.bf16.msra.mxu1 %v3132_v2  ;;  %v1144_v2 = vld [vmem:[#allocation7 + $0x538] sm:$0xff] }
 0x676   :  { %3134 = vmatprep.subr.bf16.mxu1 %v3575_v0  ;;  %v3183_v3 = vpack.c.bf16 %v1144_v2, %v1143_v63  ;;  %v1336_v2 = vld [vmem:[#allocation10 + $0x60] sm:$0xff] }
 0x679   :  { %3136 = vmatpush3.bf16.msra.mxu1 %v3135_v5  ;;  %v1146_v5 = vld [vmem:[#allocation7 + $0x548] sm:$0xff] }
 0x67a   :  { %3137 = vmatprep.subr.bf16.mxu1 %v3575_v0  ;;  %v3186_v6 = vpack.c.bf16 %v1146_v5, %v1145_v4  ;;  %v1341_v4 = vld [vmem:[#allocation10 + $0x88] sm:$0xff] }
 0x67b   :  { %v1345_v5 = vld [vmem:[#allocation10 + $0xa8] sm:$0xff] }
 0x67d   :  { %3139 = vmatpush3.bf16.msra.mxu1 %v3138_v8  ;;  %v1148_v8 = vld [vmem:[#allocation7 + $0x558] sm:$0xff] }
 0x67e   :  { %3140 = vmatprep.subr.bf16.mxu1 %v3575_v0  ;;  %v3189_v9 = vpack.c.bf16 %v1148_v8, %v1147_v7  ;;  %v1340_v7 = vld [vmem:[#allocation10 + $0x80] sm:$0xff] }
 0x67f   :  { %v1344_v8 = vld [vmem:[#allocation10 + $0xa0] sm:$0xff] }
 0x681   :  { %3142 = vmatpush3.bf16.msra.mxu1 %v3141_v11 }
 0x682   :  { %3143 = vmatprep.subr.bf16.mxu1 %v3575_v0 }
 0x685   :  { %3145 = vmatpush3.bf16.msra.mxu1 %v3144_v20  ;;  %v1152_v20 = vld [vmem:[#allocation7 + $0x578] sm:$0xff] }
 0x686   :  { %3146 = vmatprep.subr.bf16.mxu1 %v3575_v0  ;;  %v3195_v21 = vpack.c.bf16 %v1152_v20, %v1151_v19  ;;  %v1356_v19 = vld [vmem:[#allocation10 + $0x100] sm:$0xff] }
 0x687   :  { %v1360_v20 = vld [vmem:[#allocation10 + $0x120] sm:$0xff] }
 0x689   :  { %3148 = vmatpush3.bf16.msra.mxu1 %v3147_v23  ;;  %v1232_v23 = vld [vmem:[#allocation7 + $0x588] sm:$0xff] }
 0x68a   :  { %3173 = vmatprep.subr.bf16.mxu1 %v3575_v0  ;;  %v3198_v25 = vpack.c.bf16 %v1232_v23, %v1231_v22  ;;  %v1365_v22 = vld [vmem:[#allocation10 + $0x148] sm:$0xff] }
 0x68b   :  { %v1369_v23 = vld [vmem:[#allocation10 + $0x168] sm:$0xff] }
 0x73f   :  { %v848_v13 = vpop.f32.mrb[6].mxu1 }
 0x740   :  { %v849_v14 = vadd.f32 %v2195_v12, %v848_v13  ;;  %v2751_v15 = vpop.f32.mrb[7].mxu1 }
 0x742   :  { %v852_v16 = vmax.f32 %v849_v14, 0.0 }
 0x744   :  { %v853_v17 = vadd.f32 %v852_v16, %v759_v49  ;;  %v1056_v49 = vld [vmem:[#allocation7 + $0x4e8] sm:$0xff]  ;;  %v1149_v16 = vld [vmem:[#allocation7 + $0x560] sm:$0xff] }
 0x745   :  { %v3168_v50 = vpack.c.bf16 %v1056_v49, %v1055_v48  ;;  %v1245_v49 = vld [vmem:[#allocation7 + $0x5f0] sm:$0xff] }
 0x746   :  { %2785 = vmatmul.mubr.f32.vlgmr.msra.gmra.mrb[8].mxu0 %v853_v17 }
 0x747   :  { %2854 = vmatprep.mubr.msk.f32.mxu0 %vm3576_vm0, %v3577_v1  ;;  %3151 = vmatpush3.bf16.msra.mxu0 %v3150_v27  ;;  %v3201_v27 = vpack.c.bf16 %v1234_v26, %v1233_v24  ;;  %v3241_v24 = vpack.c.bf16 %v1369_v23, %v1365_v22  ;;  %v1368_v26 = vld [vmem:[#allocation10 + $0x160] sm:$0xff] }
 0x748   :  { %3152 = vmatprep.subr.bf16.mxu0 %v3575_v0 }
 0x74b   :  { %3154 = vmatpush3.bf16.msra.mxu0 %v3153_v29  ;;  %v1236_v29 = vld [vmem:[#allocation7 + $0x5a8] sm:$0xff] }
 0x74c   :  { %3155 = vmatprep.subr.bf16.mxu0 %v3575_v0  ;;  %v3204_v30 = vpack.c.bf16 %v1236_v29, %v1235_v28  ;;  %v1373_v28 = vld [vmem:[#allocation10 + $0x188] sm:$0xff] }
 0x74d   :  { %v1377_v29 = vld [vmem:[#allocation10 + $0x1a8] sm:$0xff] }
 0x74f   :  { %3157 = vmatpush3.bf16.msra.mxu0 %v3156_v32  ;;  %v1238_v32 = vld [vmem:[#allocation7 + $0x5b8] sm:$0xff] }
 0x750   :  { %3158 = vmatprep.subr.bf16.mxu0 %v3575_v0  ;;  %v3207_v33 = vpack.c.bf16 %v1238_v32, %v1237_v31  ;;  %v2199_v31 = vld [vmem:[#allocation8 + $0xa] ss:$0 sm:$0xff] }
 0x753   :  { %3160 = vmatpush3.bf16.msra.mxu0 %v3159_v35  ;;  %v1240_v35 = vld [vmem:[#allocation7 + $0x5c8] sm:$0xff] }
 0x754   :  { %3161 = vmatprep.subr.bf16.mxu0 %v3575_v0  ;;  %v3210_v36 = vpack.c.bf16 %v1240_v35, %v1239_v34  ;;  %v1326_v35 = vld [vmem:[#allocation10 + $0x10] sm:$0xff] }
 0x757   :  { %3163 = vmatpush3.bf16.msra.mxu0 %v3162_v38  ;;  %v1242_v38 = vld [vmem:[#allocation7 + $0x5d8] sm:$0xff] }
 0x758   :  { %3164 = vmatprep.subr.bf16.mxu0 %v3575_v0  ;;  %v3213_v39 = vpack.c.bf16 %v1242_v38, %v1241_v37  ;;  %v1335_v37 = vld [vmem:[#allocation10 + $0x58] sm:$0xff] }
 0x759   :  { %v1339_v38 = vld [vmem:[#allocation10 + $0x78] sm:$0xff] }
 0x75b   :  { %3166 = vmatpush3.bf16.msra.mxu0 %v3165_v41 }
 0x75c   :  { %3167 = vmatprep.subr.bf16.mxu0 %v3575_v0 }
 0x75f   :  { %3169 = vmatpush3.bf16.msra.mxu0 %v3168_v50  ;;  %v1246_v50 = vld [vmem:[#allocation7 + $0x5f8] sm:$0xff] }
 0x760   :  { %3170 = vmatprep.subr.bf16.mxu0 %v3575_v0  ;;  %v3219_v51 = vpack.c.bf16 %v1246_v50, %v1245_v49  ;;  %v1342_v50 = vld [vmem:[#allocation10 + $0x90] sm:$0xff] }
 0x763   :  { %3172 = vmatpush3.bf16.msra.mxu0 %v3171_v53  ;;  %v1329_v53 = vld [vmem:[#allocation10 + $0x28] sm:$0xff] }
 0x764   :  { %3197 = vmatprep.subr.bf16.mxu0 %v3575_v0  ;;  %v3221_v55 = vpack.c.bf16 %v1329_v53, %v1325_v52  ;;  %v1351_v52 = vld [vmem:[#allocation10 + $0xd8] sm:$0xff] }
 0x765   :  { %v1355_v53 = vld [vmem:[#allocation10 + $0xf8] sm:$0xff] }
 0x819   :  { %v942_v43 = vpop.f32.mrb[8].mxu0 }
 0x81a   :  { %v943_v44 = vadd.f32 %v2196_v42, %v942_v43  ;;  %v2786_v45 = vpop.f32.mrb[9].mxu0 }
 0x81c   :  { %v946_v46 = vmax.f32 %v943_v44, 0.0 }
 0x81e   :  { %v947_v47 = vadd.f32 %v946_v46, %v853_v17  ;;  %v1150_v17 = vld [vmem:[#allocation7 + $0x568] sm:$0xff]  ;;  %v1243_v46 = vld [vmem:[#allocation7 + $0x5e0] sm:$0xff] }
 0x81f   :  { %v3192_v18 = vpack.c.bf16 %v1150_v17, %v1149_v16  ;;  %v1357_v16 = vld [vmem:[#allocation10 + $0x108] sm:$0xff] }
 0x820   :  { %2820 = vmatmul.mubr.f32.vlgmr.msra.gmra.mrb[8].mxu1 %v947_v47  ;;  %v1361_v17 = vld [vmem:[#allocation10 + $0x128] sm:$0xff] }
 0x821   :  { %2889 = vmatprep.mubr.msk.f32.mxu1 %vm3576_vm0, %v3577_v1  ;;  %3175 = vmatpush3.bf16.msra.mxu1 %v3174_v57  ;;  %v1324_v57 = vld [vmem:[#allocation10] sm:$0xff] }
 0x822   :  { %3176 = vmatprep.subr.bf16.mxu1 %v3575_v0  ;;  %v3223_v60 = vpack.c.bf16 %v1328_v58, %v1324_v57  ;;  %v1359_v57 = vld [vmem:[#allocation10 + $0x118] sm:$0xff] }
 0x823   :  { %v1363_v58 = vld [vmem:[#allocation10 + $0x138] sm:$0xff] }
 0x825   :  { %3178 = vmatpush3.bf16.msra.mxu1 %v3177_v59  ;;  %v3253_v59 = vpack.c.bf16 %v1331_v56, %v1327_v54  ;;  %v3265_v54 = vpack.c.bf16 %v1355_v53, %v1351_v52  ;;  %v1354_v56 = vld [vmem:[#allocation10 + $0xf0] sm:$0xff]  ;;  %v1967_v53 = vld [vmem:[#allocation11 + $0x18] sm:$0xff] }
 0x826   :  { %3179 = vmatprep.subr.bf16.mxu1 %v3575_v0  ;;  %v1966_v52 = vld [vmem:[#allocation11 + $0x10] sm:$0xff] }
 0x829   :  { %3181 = vmatpush3.bf16.msra.mxu1 %v3180_v62  ;;  %v1337_v62 = vld [vmem:[#allocation10 + $0x68] sm:$0xff] }
 0x82a   :  { %3182 = vmatprep.subr.bf16.mxu1 %v3575_v0  ;;  %v3225_v63 = vpack.c.bf16 %v1337_v62, %v1333_v61  ;;  %v1358_v61 = vld [vmem:[#allocation10 + $0x110] sm:$0xff]  ;;  %v1367_v62 = vld [vmem:[#allocation10 + $0x158] sm:$0xff] }
 0x82d   :  { %3184 = vmatpush3.bf16.msra.mxu1 %v3183_v3 }
 0x82e   :  { %3185 = vmatprep.subr.bf16.mxu1 %v3575_v0 }
 0x831   :  { %3187 = vmatpush3.bf16.msra.mxu1 %v3186_v6  ;;  %v3229_v6 = vpack.c.bf16 %v1345_v5, %v1341_v4  ;;  %v1370_v4 = vld [vmem:[#allocation10 + $0x170] sm:$0xff]  ;;  %v1375_v5 = vld [vmem:[#allocation10 + $0x198] sm:$0xff] }
 0x832   :  { %3188 = vmatprep.subr.bf16.mxu1 %v3575_v0 }
 0x835   :  { %3190 = vmatpush3.bf16.msra.mxu1 %v3189_v9  ;;  %v3231_v9 = vpack.c.bf16 %v1344_v8, %v1340_v7 }
 0x836   :  { %3191 = vmatprep.subr.bf16.mxu1 %v3575_v0 }
 0x839   :  { %3193 = vmatpush3.bf16.msra.mxu1 %v3192_v18  ;;  %v3237_v18 = vpack.c.bf16 %v1361_v17, %v1357_v16  ;;  %v1385_v16 = vld [vmem:[#allocation10 + $0x1e8] sm:$0xff]  ;;  %v1383_v17 = vld [vmem:[#allocation10 + $0x1d8] sm:$0xff] }
 0x83a   :  { %3194 = vmatprep.subr.bf16.mxu1 %v3575_v0 }
 0x83d   :  { %3196 = vmatpush3.bf16.msra.mxu1 %v3195_v21  ;;  %v3239_v21 = vpack.c.bf16 %v1360_v20, %v1356_v19  ;;  %v1387_v19 = vld [vmem:[#allocation10 + $0x1f8] sm:$0xff]  ;;  %v1380_v20 = vld [vmem:[#allocation10 + $0x1c0] sm:$0xff] }
 0x83e   :  { %3222 = vmatprep.subr.bf16.mxu1 %v3221_v55  ;;  %v1350_v55 = vld [vmem:[#allocation10 + $0xd0] sm:$0xff]  ;;  %v3281_v22 = vpack.c.bf16 %v1387_v19, %v1383_v17  ;;  %v2020_v17 = vld [vmem:[#allocation11 + $0x1c0] sm:$0xff] }
 0x8f3   :  { %v1036_v11 = vpop.f32.mrb[8].mxu1 }
 0x8f4   :  { %v1037_v12 = vadd.f32 %v2197_v10, %v1036_v11  ;;  %v2821_v13 = vpop.f32.mrb[9].mxu1  ;;  %v1349_v10 = vld [vmem:[#allocation10 + $0xc8] sm:$0xff] }
 0x8f5   :  { %v1353_v11 = vld [vmem:[#allocation10 + $0xe8] sm:$0xff]  ;;  %v1348_v13 = vld [vmem:[#allocation10 + $0xc0] sm:$0xff] }
 0x8f6   :  { %v1040_v14 = vmax.f32 %v1037_v12, 0.0  ;;  %v3233_v12 = vpack.c.bf16 %v1353_v11, %v1349_v10  ;;  %v1376_v10 = vld [vmem:[#allocation10 + $0x1a0] sm:$0xff]  ;;  %v1374_v11 = vld [vmem:[#allocation10 + $0x190] sm:$0xff] }
 0x8f8   :  { %v1041_v15 = vadd.f32 %v1040_v14, %v947_v47  ;;  %v1244_v47 = vld [vmem:[#allocation7 + $0x5e8] sm:$0xff]  ;;  %v1352_v14 = vld [vmem:[#allocation10 + $0xe0] sm:$0xff] }
 0x8f9   :  { %v3216_v48 = vpack.c.bf16 %v1244_v47, %v1243_v46  ;;  %v1343_v46 = vld [vmem:[#allocation10 + $0x98] sm:$0xff] }
 0x8fa   :  { %2855 = vmatmul.mubr.f32.vlgmr.msra.gmra.mrb[10].mxu0 %v1041_v15  ;;  %v1347_v47 = vld [vmem:[#allocation10 + $0xb8] sm:$0xff] }
 0x8fb   :  { %2924 = vmatprep.mubr.msk.f32.mxu0 %vm3576_vm0, %v3577_v1  ;;  %3199 = vmatpush3.bf16.msra.mxu0 %v3198_v25  ;;  %v1364_v25 = vld [vmem:[#allocation10 + $0x140] sm:$0xff]  ;;  %v3261_v49 = vpack.c.bf16 %v1347_v47, %v1343_v46  ;;  %v1982_v46 = vld [vmem:[#allocation11 + $0x90] sm:$0xff] }
 0x8fc   :  { %3200 = vmatprep.subr.bf16.mxu0 %v3575_v0 }
 0x8ff   :  { %3202 = vmatpush3.bf16.msra.mxu0 %v3201_v27  ;;  %v3243_v27 = vpack.c.bf16 %v1368_v26, %v1364_v25  ;;  %v1386_v25 = vld [vmem:[#allocation10 + $0x1f0] sm:$0xff] }
 0x900   :  { %3203 = vmatprep.subr.bf16.mxu0 %v3575_v0 }
 0x903   :  { %3205 = vmatpush3.bf16.msra.mxu0 %v3204_v30  ;;  %v3245_v30 = vpack.c.bf16 %v1377_v29, %v1373_v28 }
 0x904   :  { %3206 = vmatprep.subr.bf16.mxu0 %v3575_v0 }
 0x907   :  { %3208 = vmatpush3.bf16.msra.mxu0 %v3207_v33 }
 0x908   :  { %3209 = vmatprep.subr.bf16.mxu0 %v3575_v0 }
 0x90b   :  { %3211 = vmatpush3.bf16.msra.mxu0 %v3210_v36  ;;  %v1330_v36 = vld [vmem:[#allocation10 + $0x30] sm:$0xff] }
 0x90c   :  { %3212 = vmatprep.subr.bf16.mxu0 %v3575_v0 }
 0x90f   :  { %3214 = vmatpush3.bf16.msra.mxu0 %v3213_v39 }
 0x910   :  { %3215 = vmatprep.subr.bf16.mxu0 %v3575_v0 }
 0x913   :  { %3217 = vmatpush3.bf16.msra.mxu0 %v3216_v48 }
 0x914   :  { %3218 = vmatprep.subr.bf16.mxu0 %v3575_v0  ;;  %v1332_v0 = vld [vmem:[#allocation10 + $0x40] sm:$0xff] }
 0x915   :  { %v3227_v3 = vpack.c.bf16 %v1336_v2, %v1332_v0 }
 0x917   :  { %3220 = vmatpush3.bf16.msra.mxu0 %v3219_v51  ;;  %v1346_v51 = vld [vmem:[#allocation10 + $0xb0] sm:$0xff] }
 0x918   :  { %3254 = vmatprep.subr.bf16.mxu0 %v3253_v59  ;;  %v3267_v59 = vpack.c.bf16 %v1354_v56, %v1350_v55  ;;  %v1999_v55 = vld [vmem:[#allocation11 + $0x118] sm:$0xff]  ;;  %v1984_v56 = vld [vmem:[#allocation11 + $0xa0] sm:$0xff] }
 0x9cd   :  { %v1130_v41 = vpop.f32.mrb[10].mxu0 }
 0x9ce   :  { %v1131_v42 = vadd.f32 %v2198_v40, %v1130_v41  ;;  %v2856_v43 = vpop.f32.mrb[11].mxu0  ;;  %v3255_v40 = vpack.c.bf16 %v1330_v36, %v1326_v35  ;;  %v2012_v35 = vld [vmem:[#allocation11 + $0x180] sm:$0xff] }
 0x9cf   :  { %v1334_v43 = vld [vmem:[#allocation10 + $0x50] sm:$0xff] }
 0x9d0   :  { %v1134_v44 = vmax.f32 %v1131_v42, 0.0  ;;  %v3257_v42 = vpack.c.bf16 %v1339_v38, %v1335_v37  ;;  %v2013_v37 = vld [vmem:[#allocation11 + $0x188] sm:$0xff]  ;;  %v1964_v38 = vld [vmem:[#allocation11] sm:$0xff] }
 0x9d2   :  { %v3840_v45 = vadd.f32 %v1134_v44, %v1041_v15  ;;  %v3235_v15 = vpack.c.bf16 %v1352_v14, %v1348_v13  ;;  %v1338_v44 = vld [vmem:[#allocation10 + $0x70] sm:$0xff] }
 0x9d3   :  { %v3259_v48 = vpack.c.bf16 %v1338_v44, %v1334_v43  ;;  %v1378_v13 = vld [vmem:[#allocation10 + $0x1b0] sm:$0xff]  ;;  %v1996_v43 = vld [vmem:[#allocation11 + $0x100] sm:$0xff]  ;;  %v1997_v44 = vld [vmem:[#allocation11 + $0x108] sm:$0xff] }
 0x9d4   :  { %2890 = vmatmul.mubr.f32.vlgmr.msra.gmra.mrb[10].mxu1 %v3840_v45  ;;  %v3279_v14 = vpack.c.bf16 %v1378_v13, %v1374_v11  ;;  %v3319_v47 = vpack.c.bf16 %v1997_v44, %v1996_v43  ;;  %v1971_v11 = vld [vmem:[#allocation11 + $0x38] sm:$0xff]  ;;  %v2002_v13 = vld [vmem:[#allocation11 + $0x130] sm:$0xff]  ;;  %v2025_v43 = vld [vmem:[#allocation11 + $0x1e8] sm:$0xff] }
 0x9d5   :  { %1474 = vmatprep.mubr.f32.mxu1 %v3577_v1  ;;  %3224 = vmatpush1.bf16.msra.mxu1 %v3223_v60  ;;  %v3269_v60 = vpack.c.bf16 %v1363_v58, %v1359_v57  ;;  %v1985_v57 = vld [vmem:[#allocation11 + $0xa8] sm:$0xff] }
 0x9d6   :  { %3226 = vmatprep.subr.bf16.mxu1 %v3225_v63  ;;  %v1371_v63 = vld [vmem:[#allocation10 + $0x178] sm:$0xff] }
 0x9d7   :  { %v3273_v2 = vpack.c.bf16 %v1371_v63, %v1367_v62  ;;  %v1969_v63 = vld [vmem:[#allocation11 + $0x28] sm:$0xff] }
 0x9d9   :  { %3228 = vmatpush1.bf16.msra.mxu1 %v3227_v3  ;;  %v1366_v3 = vld [vmem:[#allocation10 + $0x150] sm:$0xff] }
 0x9da   :  { %3230 = vmatprep.subr.bf16.mxu1 %v3229_v6  ;;  %v1379_v6 = vld [vmem:[#allocation10 + $0x1b8] sm:$0xff]  ;;  %v3275_v7 = vpack.c.bf16 %v1370_v4, %v1366_v3  ;;  %v1986_v4 = vld [vmem:[#allocation11 + $0xb0] sm:$0xff] }
 0x9db   :  { %v3277_v8 = vpack.c.bf16 %v1379_v6, %v1375_v5  ;;  %v1987_v5 = vld [vmem:[#allocation11 + $0xb8] sm:$0xff]  ;;  %v2018_v6 = vld [vmem:[#allocation11 + $0x1b0] sm:$0xff] }
 0x9dd   :  { %3232 = vmatpush1.bf16.msra.mxu1 %v3231_v9  ;;  %v1372_v9 = vld [vmem:[#allocation10 + $0x180] sm:$0xff] }
 0x9de   :  { %3234 = vmatprep.subr.bf16.mxu1 %v3233_v12  ;;  %v3247_v12 = vpack.c.bf16 %v1376_v10, %v1372_v9  ;;  %v2019_v9 = vld [vmem:[#allocation11 + $0x1b8] sm:$0xff]  ;;  %v1970_v10 = vld [vmem:[#allocation11 + $0x30] sm:$0xff] }
 0x9df   :  { %v3299_v19 = vpack.c.bf16 %v1971_v11, %v1970_v10 }
 0x9e1   :  { %3236 = vmatpush1.bf16.msra.mxu1 %v3235_v15  ;;  %v1381_v15 = vld [vmem:[#allocation10 + $0x1c8] sm:$0xff] }
 0x9e2   :  { %3238 = vmatprep.subr.bf16.mxu1 %v3237_v18  ;;  %v3249_v18 = vpack.c.bf16 %v1385_v16, %v1381_v15  ;;  %v1988_v15 = vld [vmem:[#allocation11 + $0xc0] sm:$0xff]  ;;  %v1989_v16 = vld [vmem:[#allocation11 + $0xc8] sm:$0xff] }
 0x9e5   :  { %3240 = vmatpush1.bf16.msra.mxu1 %v3239_v21  ;;  %v1384_v21 = vld [vmem:[#allocation10 + $0x1e0] sm:$0xff] }
 0x9e6   :  { %3242 = vmatprep.subr.bf16.mxu1 %v3241_v24  ;;  %v3251_v23 = vpack.c.bf16 %v1384_v21, %v1380_v20  ;;  %v1382_v24 = vld [vmem:[#allocation10 + $0x1d0] sm:$0xff]  ;;  %v3301_v21 = vpack.c.bf16 %v1989_v16, %v1988_v15 }
 0x9e7   :  { %v3283_v26 = vpack.c.bf16 %v1386_v25, %v1382_v24  ;;  %v2004_v24 = vld [vmem:[#allocation11 + $0x140] sm:$0xff] }
 0x9e9   :  { %3244 = vmatpush1.bf16.msra.mxu1 %v3243_v27  ;;  %v2200_v27 = vld [vmem:[#allocation8 + $0xb] ss:$0 sm:$0xff] }
 0x9ea   :  { %3246 = vmatprep.subr.bf16.mxu1 %v3245_v30 }
 0x9ed   :  { %3248 = vmatpush1.bf16.msra.mxu1 %v3247_v12  ;;  %v3329_v12 = vpack.c.bf16 %v2019_v9, %v2018_v6 }
 0x9ee   :  { %3250 = vmatprep.subr.bf16.mxu1 %v3249_v18  ;;  %v2021_v18 = vld [vmem:[#allocation11 + $0x1c8] sm:$0xff] }
 0x9ef   :  { %v3333_v25 = vpack.c.bf16 %v2021_v18, %v2020_v17 }
 0x9f1   :  { %3252 = vmatpush1.bf16.msra.mxu1 %v3251_v23  ;;  %v1973_v23 = vld [vmem:[#allocation11 + $0x48] sm:$0xff] }
 0xaa7   :  { %v1224_v32 = vpop.f32.mrb[10].mxu1 }
 0xaa8   :  { %v1225_v33 = vadd.f32 %v2199_v31, %v1224_v32  ;;  %v2891_v34 = vpop.f32.mrb[11].mxu1 }
 0xaa9   :  { %v1981_v34 = vld [vmem:[#allocation11 + $0x88] sm:$0xff] }
 0xaaa   :  { %v1228_v39 = vmax.f32 %v1225_v33, 0.0  ;;  %v1980_v33 = vld [vmem:[#allocation11 + $0x80] sm:$0xff] }
 0xaab   :  { %v3285_v36 = vpack.c.bf16 %v1981_v34, %v1980_v33  ;;  %v1974_v34 = vld [vmem:[#allocation11 + $0x50] sm:$0xff] }
 0xaac   :  { %v3846_v41 = vadd.f32 %v1228_v39, %v3840_v45  ;;  %v3263_v45 = vpack.c.bf16 %v1346_v51, %v1342_v50  ;;  %v1965_v39 = vld [vmem:[#allocation11 + $0x8] sm:$0xff]  ;;  %v2015_v50 = vld [vmem:[#allocation11 + $0x198] sm:$0xff] }
 0xaad   :  { %3286 = vmatprep.subr.bf16.mxu1 %v3285_v36  ;;  %v2006_v36 = vld [vmem:[#allocation11 + $0x150] sm:$0xff] }
 0xaae   :  { %2925 = vmatmul.mubr.f32.vlgmr.msra.gmra.mrb[12].mxu0 %v3846_v41 }
 0xaaf   :  { %3256 = vmatpush1.bf16.msra.mxu0 %v3255_v40  ;;  %1545 = vmatprep.mubr.f32.mxu0 %v3577_v1  ;;  %v1362_v1 = vld [vmem:[#allocation10 + $0x130] sm:$0xff]  ;;  %v3317_v40 = vpack.c.bf16 %v2013_v37, %v2012_v35  ;;  %v1975_v35 = vld [vmem:[#allocation11 + $0x58] sm:$0xff] }
 0xab0   :  { %3258 = vmatprep.subr.bf16.mxu0 %v3257_v42  ;;  %v3271_v0 = vpack.c.bf16 %v1362_v1, %v1358_v61  ;;  %v3287_v42 = vpack.c.bf16 %v1965_v39, %v1964_v38  ;;  %v2017_v61 = vld [vmem:[#allocation11 + $0x1a8] sm:$0xff]  ;;  %v1968_v1 = vld [vmem:[#allocation11 + $0x20] sm:$0xff]  ;;  %v2007_v38 = vld [vmem:[#allocation11 + $0x158] sm:$0xff]  ;;  %v3307_v44 = vpack.c.bf16 %v1975_v35, %v1974_v34 }
 0xab1   :  { %v3295_v3 = vpack.c.bf16 %v1969_v63, %v1968_v1  ;;  %v1992_v39 = vld [vmem:[#allocation11 + $0xe0] sm:$0xff]  ;;  %v2011_v1 = vld [vmem:[#allocation11 + $0x178] sm:$0xff] }
 0xab3   :  { %3260 = vmatpush1.bf16.msra.mxu0 %v3259_v48  ;;  %v1983_v48 = vld [vmem:[#allocation11 + $0x98] sm:$0xff] }
 0xab4   :  { %3262 = vmatprep.subr.bf16.mxu0 %v3261_v49  ;;  %v2014_v49 = vld [vmem:[#allocation11 + $0x190] sm:$0xff] }
 0xab5   :  { %v3321_v51 = vpack.c.bf16 %v2015_v50, %v2014_v49  ;;  %v1977_v49 = vld [vmem:[#allocation11 + $0x68] sm:$0xff]  ;;  %v2008_v50 = vld [vmem:[#allocation11 + $0x160] sm:$0xff] }
 0xab7   :  { %3264 = vmatpush1.bf16.msra.mxu0 %v3263_v45  ;;  %v1998_v45 = vld [vmem:[#allocation11 + $0x110] sm:$0xff] }
 0xab8   :  { %3266 = vmatprep.subr.bf16.mxu0 %v3265_v54  ;;  %v3291_v54 = vpack.c.bf16 %v1967_v53, %v1966_v52  ;;  %v3323_v58 = vpack.c.bf16 %v1999_v55, %v1998_v45  ;;  %v1994_v52 = vld [vmem:[#allocation11 + $0xf0] sm:$0xff]  ;;  %v1995_v53 = vld [vmem:[#allocation11 + $0xf8] sm:$0xff] }
 0xab9   :  { %v2026_v45 = vld [vmem:[#allocation11 + $0x1f0] sm:$0xff] }
 0xabb   :  { %3268 = vmatpush1.bf16.msra.mxu0 %v3267_v59  ;;  %v3293_v59 = vpack.c.bf16 %v1985_v57, %v1984_v56  ;;  %v3313_v57 = vpack.c.bf16 %v1995_v53, %v1994_v52  ;;  %v3578_v52 = vmov 683565275  }
 0xabc   :  { %3270 = vmatprep.subr.bf16.mxu0 %v3269_v60  ;;  %v2016_v60 = vld [vmem:[#allocation11 + $0x1a0] sm:$0xff] }
 0xabd   :  { %v3325_v62 = vpack.c.bf16 %v2017_v61, %v2016_v60  ;;  %v2010_v61 = vld [vmem:[#allocation11 + $0x170] sm:$0xff] }
 0xabe   :  { %v3347_v63 = vpack.c.bf16 %v2011_v1, %v2010_v61  ;;  %v3582_v61 = vmov 920167782  }
 0xabf   :  { %3272 = vmatpush1.bf16.msra.mxu0 %v3271_v0  ;;  %v2000_v0 = vld [vmem:[#allocation11 + $0x120] sm:$0xff] }
 0xac0   :  { %3274 = vmatprep.subr.bf16.mxu0 %v3273_v2  ;;  %v2001_v2 = vld [vmem:[#allocation11 + $0x128] sm:$0xff] }
 0xac3   :  { %3276 = vmatpush1.bf16.msra.mxu0 %v3275_v7  ;;  %v3327_v7 = vpack.c.bf16 %v2001_v2, %v2000_v0  ;;  %v1390_v0 = vlaneseq }
 0xac4   :  { %3278 = vmatprep.subr.bf16.mxu0 %v3277_v8  ;;  %v3297_v8 = vpack.c.bf16 %v1987_v5, %v1986_v4  ;;  %v1388_v5 = vld [vmem:[%s4175_s6] sm:$0xf]  ;;  %s3584_s6 = smov [#allocation13]  }
 0xac5   :  { %v1391_v2 = vshrl.u32 %v1390_v0, 7  ;;  %s2175_s10 = sshll.u32 %s3584_s6, 4  ;;  %s2176_s10 = int_to_ptr.vmem [resolvable:$true] %s2175_s10 }
 0xac6   :  { %s3533_s11 = scalar_lea.vmem %s2176_s10, 128  ;;  %p3538_p7 = scmp.lt.s32.totalorder %s2176_s10, %s2176_s10 }
 0xac7   :  { %3280 = vmatpush1.bf16.msra.mxu0 %v3279_v14  ;;  %v2003_v14 = vld [vmem:[#allocation11 + $0x138] sm:$0xff]  ;;  %v1400_v4 = vsub.s32 2, %v1391_v2  ;;  %v1396_v6 = vsub.s32 1, %v1391_v2  ;;  %p3534_p6 = scmp.ne.s32.totalorder %s2176_s10, %s3533_s11  ;;  %p3539_p8 = scmp.lt.s32.totalorder %s3533_s11, %s3533_s11 }
 0xac8   :  { %3282 = vmatprep.subr.bf16.mxu0 %v3281_v22  ;;  %v3331_v20 = vpack.c.bf16 %v2003_v14, %v2002_v13  ;;  %v1972_v22 = vld [vmem:[#allocation11 + $0x40] sm:$0xff] }
 0xac9   :  { %v1401_v9 = vrot.slane %v1388_v5, %v1400_v4  ;;  %v1397_v10 = vrot.slane %v1388_v5, %v1396_v6  ;;  %v3583_v4 = vmov 1326507024   ;;  %p3540_p9 = por %p3539_p8, %p3538_p7 }
 0xacb   :  { %3284 = vmatpush1.bf16.msra.mxu0 %v3283_v26  ;;  %v2005_v26 = vld [vmem:[#allocation11 + $0x148] sm:$0xff]  ;;  %p3541_p10 = pnand %p3540_p9, %p3534_p6 }
 0xacc   :  { %3318 = vmatprep.subr.bf16.mxu0 %v3317_v40  ;;  %v1993_v40 = vld [vmem:[#allocation11 + $0xe8] sm:$0xff] }
 0xb81   :  { %v1318_v28 = vpop.f32.mrb[12].mxu0 }
 0xb82   :  { %v1319_v29 = vadd.f32 %v2200_v27, %v1318_v28  ;;  %v2926_v30 = vpop.f32.mrb[13].mxu0  ;;  %v1990_v27 = vld [vmem:[#allocation11 + $0xd0] sm:$0xff]  ;;  %v1991_v28 = vld [vmem:[#allocation11 + $0xd8] sm:$0xff] }
 0xb83   :  { %v2023_v30 = vld [vmem:[#allocation11 + $0x1d8] sm:$0xff]  ;;  %v3305_v33 = vpack.c.bf16 %v1991_v28, %v1990_v27 }
 0xb84   :  { %v1322_v31 = vmax.f32 %v1319_v29, 0.0  ;;  %v2022_v29 = vld [vmem:[#allocation11 + $0x1d0] sm:$0xff] }
 0xb85   :  { %v3337_v37 = vpack.c.bf16 %v2023_v30, %v2022_v29 }
 0xb86   :  { %v1323_v32 = vadd.f32 %v1322_v31, %v3846_v41  ;;  %v3289_v41 = vpack.c.bf16 %v1983_v48, %v1982_v46  ;;  %v3303_v31 = vpack.c.bf16 %v1973_v23, %v1972_v22  ;;  %v3339_v46 = vpack.c.bf16 %v2007_v38, %v2006_v36  ;;  %v1976_v48 = vld [vmem:[#allocation11 + $0x60] sm:$0xff] }
 0xb87   :  { %v3311_v55 = vpack.c.bf16 %v1977_v49, %v1976_v48 }
 0xb88   :  { %1475 = vmatmul.mubr.f32.vlgmr.msra.gmra.mrb[12].mxu1 %v1323_v32  ;;  %1546 = vmatmul.mubr.f32.vlgmr.msra.gmra.mrb[14].mxu0 %v1323_v32  ;;  %v3335_v32 = vpack.c.bf16 %v2005_v26, %v2004_v24 }
 0xb89   :  { %3288 = vmatpush3.bf16.msra.mxu1 %v3287_v42  ;;  %3320 = vmatpush3.bf16.msra.mxu0 %v3319_v47  ;;  %v2024_v42 = vld [vmem:[#allocation11 + $0x1e0] sm:$0xff]  ;;  %v3309_v47 = vpack.c.bf16 %v1993_v40, %v1992_v39 }
 0xb8a   :  { %3290 = vmatprep.subr.bf16.mxu1 %v3289_v41  ;;  %3322 = vmatprep.subr.bf16.mxu0 %v3321_v51  ;;  %v3341_v41 = vpack.c.bf16 %v2025_v43, %v2024_v42  ;;  %v2009_v51 = vld [vmem:[#allocation11 + $0x168] sm:$0xff] }
 0xb8b   :  { %v3343_v56 = vpack.c.bf16 %v2009_v51, %v2008_v50 }
 0xb8d   :  { %3292 = vmatpush3.bf16.msra.mxu1 %v3291_v54  ;;  %3324 = vmatpush3.bf16.msra.mxu0 %v3323_v58  ;;  %v2027_v54 = vld [vmem:[#allocation11 + $0x1f8] sm:$0xff]  ;;  %v1978_v58 = vld [vmem:[#allocation11 + $0x70] sm:$0xff] }
 0xb8e   :  { %3294 = vmatprep.subr.bf16.mxu1 %v3293_v59  ;;  %3326 = vmatprep.subr.bf16.mxu0 %v3325_v62  ;;  %v1979_v59 = vld [vmem:[#allocation11 + $0x78] sm:$0xff]  ;;  %v3345_v60 = vpack.c.bf16 %v2027_v54, %v2026_v45 }
 0xb8f   :  { %v3315_v62 = vpack.c.bf16 %v1979_v59, %v1978_v58  ;;  %v3581_v59 = vmov 2102212464  }
 0xb91   :  { %3296 = vmatpush3.bf16.msra.mxu1 %v3295_v3  ;;  %3328 = vmatpush3.bf16.msra.mxu0 %v3327_v7  ;;  %v1392_v3 = vsub.s32 0, %v1391_v2  ;;  %v1404_v7 = vsub.s32 3, %v1391_v2 }
 0xb92   :  { %3298 = vmatprep.subr.bf16.mxu1 %v3297_v8  ;;  %3330 = vmatprep.subr.bf16.mxu0 %v3329_v12 }
 0xb93   :  { %v1393_v8 = vrot.slane %v1388_v5, %v1392_v3  ;;  %v1405_v11 = vrot.slane %v1388_v5, %v1404_v7 }
 0xb95   :  { %3300 = vmatpush3.bf16.msra.mxu1 %v3299_v19  ;;  %3332 = vmatpush3.bf16.msra.mxu0 %v3331_v20 }
 0xb96   :  { %3302 = vmatprep.subr.bf16.mxu1 %v3301_v21  ;;  %3334 = vmatprep.subr.bf16.mxu0 %v3333_v25 }
 0xb99   :  { %3304 = vmatpush3.bf16.msra.mxu1 %v3303_v31  ;;  %3336 = vmatpush3.bf16.msra.mxu0 %v3335_v32 }
 0xb9a   :  { %3306 = vmatprep.subr.bf16.mxu1 %v3305_v33  ;;  %3338 = vmatprep.subr.bf16.mxu0 %v3337_v37 }
 0xb9d   :  { %3308 = vmatpush3.bf16.msra.mxu1 %v3307_v44  ;;  %3340 = vmatpush3.bf16.msra.mxu0 %v3339_v46 }
 0xb9e   :  { %3310 = vmatprep.subr.bf16.mxu1 %v3309_v47  ;;  %3342 = vmatprep.subr.bf16.mxu0 %v3341_v41 }
 0xba1   :  { %3312 = vmatpush3.bf16.msra.mxu1 %v3311_v55  ;;  %3344 = vmatpush3.bf16.msra.mxu0 %v3343_v56  ;;  %v3579_v55 = vmov 2475754826  }
 0xba2   :  { %3314 = vmatprep.subr.bf16.mxu1 %v3313_v57  ;;  %3346 = vmatprep.subr.bf16.mxu0 %v3345_v60  ;;  %v3580_v57 = vmov 2131351028  }
 0xba5   :  { %3316 = vmatpush3.bf16.msra.mxu1 %v3315_v62  ;;  %3348 = vmatpush3.bf16.msra.mxu0 %v3347_v63 }
 0xc5b   :  { %v1476_v12 = vpop.f32.mrb[12].mxu1  ;;  %v1547_v13 = vpop.f32.mrb[14].mxu0 }
 0xc5c   :  { %v3854_v14 = vadd.f32 %v1476_v12, %v1393_v8  ;;  %v3856_v15 = vadd.f32 %v1547_v13, %v1401_v9  ;;  %v1478_v16 = vpop.f32.mrb[13].mxu1  ;;  %v1549_v17 = vpop.f32.mrb[15].mxu0 }
 0xc5d   :  { %v3858_v18 = vadd.f32 %v1478_v16, %v1397_v10  ;;  %v3860_v19 = vadd.f32 %v1549_v17, %v1405_v11 }
 0xc5e   :  { %v1552_v20 = vand.u32 2147483647, %v3854_v14  ;;  %v1555_v21 = vand.u32 2139095040, %v3854_v14  ;;  %v1758_v22 = vand.u32 2147483647, %v3856_v15  ;;  %v1761_v23 = vand.u32 2139095040, %v3856_v15 }
 0xc5f   :  { %v1658_v24 = vand.u32 2139095040, %v3858_v18  ;;  %v1864_v25 = vand.u32 2139095040, %v3860_v19 }
 0xc60   :  { %v1556_v26 = vshrl.u32 %v1555_v21, 23  ;;  %v1559_v27 = vand.u32 8388607, %v1552_v20  ;;  %v1762_v28 = vshrl.u32 %v1761_v23, 23  ;;  %v1765_v29 = vand.u32 8388607, %v1758_v22 }
 0xc61   :  { %v1659_v30 = vshrl.u32 %v1658_v24, 23  ;;  %v1865_v31 = vshrl.u32 %v1864_v25, 23 }
 0xc62   :  { %v2201_v32 = vadd.s32 4294967169, %v1556_v26  ;;  %v2209_v33 = vadd.s32 4294967169, %v1762_v28  ;;  %v1560_v35 = vor.u32 8388608, %v1559_v27  ;;  %v1766_v37 = vor.u32 8388608, %v1765_v29 }
 0xc63   :  { %v2205_v34 = vadd.s32 4294967169, %v1659_v30  ;;  %v2213_v40 = vadd.s32 4294967169, %v1865_v31 }
 0xc64   :  { %v1562_v36 = vadd.s32 1, %v2201_v32  ;;  %v1768_v38 = vadd.s32 1, %v2209_v33  ;;  %v3874_v48 = vshll.u32 %v1560_v35, 8  ;;  %v3878_v50 = vshll.u32 %v1766_v37, 8 }
 0xc65   :  { %v1665_v39 = vadd.s32 1, %v2205_v34  ;;  %v3880_v41 = vadd.s32 1, %v2213_v40 }
 0xc66   :  { %vm1563_vm2 = vcmp.gt.s32.totalorder %v1562_v36, 0  ;;  %vm1769_vm3 = vcmp.gt.s32.totalorder %v1768_v38, 0 }
 0xc67   :  { %v1564_v42 = vsel %vm1563_vm2, %v1562_v36, 0  ;;  %vm1666_vm4 = vcmp.gt.s32.totalorder %v1665_v39, 0  ;;  %v1770_v46 = vsel %vm1769_vm3, %v1768_v38, 0  ;;  %vm1872_vm14 = vcmp.gt.s32.totalorder %v3880_v41, 0 }
 0xc68   :  { %v1565_v43 = vshrl.u32 %v1564_v42, 5  ;;  %v1566_v44 = vand.u32 31, %v1564_v42  ;;  %v3872_v47 = vsel %vm1666_vm4, %v1665_v39, 0  ;;  %v3876_v49 = vshrl.u32 %v1770_v46, 5 }
 0xc69   :  { %v1772_v45 = vand.u32 31, %v1770_v46  ;;  %v3884_v54 = vand.u32 31, %v3872_v47 }
 0xc6a   :  { %v1567_v51 = vsub.s32 32, %v1566_v44  ;;  %v1569_v53 = vshll.u32 %v3578_v52, %v1566_v44  ;;  %v1572_v56 = vshll.u32 %v3579_v55, %v1566_v44  ;;  %v1575_v58 = vshll.u32 %v3580_v57, %v1566_v44 }
 0xc6b   :  { %v1578_v60 = vshll.u32 %v3581_v59, %v1566_v44  ;;  %v1581_v1 = vshll.u32 %v3582_v61, %v1566_v44  ;;  %vm1584_vm5 = vcmp.lt.s32.totalorder %v1565_v43, 1  ;;  %vm1585_vm6 = vcmp.lt.s32.totalorder %v1565_v43, 2 }
 0xc6c   :  { %v1570_v62 = vshrl.u32 %v3579_v55, %v1567_v51  ;;  %v1573_v63 = vshrl.u32 %v3580_v57, %v1567_v51  ;;  %v1576_v0 = vshrl.u32 %v3581_v59, %v1567_v51  ;;  %v1568_v2 = vshrl.u32 %v3578_v52, %v1567_v51 }
 0xc6d   :  { %v1579_v3 = vshrl.u32 %v3582_v61, %v1567_v51  ;;  %v1582_v5 = vshrl.u32 %v3583_v4, %v1567_v51  ;;  %v1773_v9 = vsub.s32 32, %v1772_v45  ;;  %vm1586_vm7 = vcmp.lt.s32.totalorder %v1565_v43, 3 }
 0xc6e   :  { %v1571_v6 = vor.u32 %v1570_v62, %v1569_v53  ;;  %v1574_v7 = vor.u32 %v1573_v63, %v1572_v56  ;;  %v1577_v8 = vor.u32 %v1576_v0, %v1575_v58  ;;  %vm1587_vm8 = vcmp.lt.s32.totalorder %v1565_v43, 4 }
 0xc6f   :  { %v1580_v10 = vor.u32 %v1579_v3, %v1578_v60  ;;  %v1583_v11 = vor.u32 %v1582_v5, %v1581_v1  ;;  %v1775_v25 = vshll.u32 %v3578_v52, %v1772_v45  ;;  %v1776_v28 = vshrl.u32 %v3579_v55, %v1773_v9 }
 0xc70   :  { %v1588_v12 = vsel %vm1584_vm5, %v1568_v2, %v1571_v6  ;;  %v1589_v13 = vsel %vm1587_vm8, %v1577_v8, 2102212464  ;;  %v1592_v16 = vsel %vm1584_vm5, %v1571_v6, %v1574_v7  ;;  %v1596_v17 = vsel %vm1584_vm5, %v1574_v7, %v1577_v8 }
 0xc71   :  { %v1590_v21 = vsel %vm1586_vm7, %v1574_v7, %v1589_v13  ;;  %v1593_v23 = vsel %vm1587_vm8, %v1580_v10, 920167782  ;;  %v1597_v24 = vsel %vm1587_vm8, %v1583_v11, 1326507024  ;;  %v1778_v29 = vshll.u32 %v3579_v55, %v1772_v45 }
 0xc72   :  { %v1594_v26 = vsel %vm1586_vm7, %v1577_v8, %v1593_v23  ;;  %v1598_v27 = vsel %vm1586_vm7, %v1580_v10, %v1597_v24  ;;  %v1591_v30 = vsel %vm1585_vm6, %v1588_v12, %v1590_v21  ;;  %v1779_v33 = vshrl.u32 %v3580_v57, %v1773_v9 }
 0xc73   :  { %v1595_v31 = vsel %vm1585_vm6, %v1592_v16, %v1594_v26  ;;  %v1599_v32 = vsel %vm1585_vm6, %v1596_v17, %v1598_v27  ;;  %v1777_v38 = vor.u32 %v1776_v28, %v1775_v25  ;;  %v1781_v40 = vshll.u32 %v3580_v57, %v1772_v45 }
 0xc74   :  { %v3907_v34 = vmul.u32.u64.low %v3874_v48, %v1599_v32  ;;  %v3908_v35 = vmul.u32.u64.high %v3874_v48, %v1599_v32, %v3907_v34  ;;  %v3911_v36 = vmul.u32.u64.low %v3874_v48, %v1595_v31  ;;  %v3912_v37 = vmul.u32.u64.high %v3874_v48, %v1595_v31, %v3911_v36 }
 0xc75   :  { %v1780_v39 = vor.u32 %v1779_v33, %v1778_v29  ;;  %v1782_v42 = vshrl.u32 %v3581_v59, %v1773_v9  ;;  %v1774_v43 = vshrl.u32 %v3578_v52, %v1773_v9  ;;  %v1784_v44 = vshll.u32 %v3581_v59, %v1772_v45 }
 0xc76   :  { %v1785_v46 = vshrl.u32 %v3582_v61, %v1773_v9  ;;  %v1788_v51 = vshrl.u32 %v3583_v4, %v1773_v9  ;;  %v1607_v53 = vmul.u32 %v3874_v48, %v1591_v30  ;;  %v1787_v58 = vshll.u32 %v3582_v61, %v1772_v45 }
 0xc77   :  { %v1783_v56 = vor.u32 %v1782_v42, %v1781_v40  ;;  %vm1790_vm9 = vcmp.lt.s32.totalorder %v3876_v49, 1  ;;  %vm1609_vm10 = vc.u32 %v3908_v35, %v3911_v36  ;;  %v1610_v60 = vadd.s32 1, %v3912_v37 }
 0xc78   :  { %v1786_v1 = vor.u32 %v1785_v46, %v1784_v44  ;;  %vm1791_vm11 = vcmp.lt.s32.totalorder %v3876_v49, 2  ;;  %v1789_v62 = vor.u32 %v1788_v51, %v1787_v58  ;;  %vm1792_vm12 = vcmp.lt.s32.totalorder %v3876_v49, 3 }
 0xc79   :  { %vm1793_vm13 = vcmp.lt.s32.totalorder %v3876_v49, 4  ;;  %v1798_v63 = vsel %vm1790_vm9, %v1777_v38, %v1780_v39  ;;  %v1611_v48 = vsel %vm1609_vm10, %v1610_v60, %v3912_v37  ;;  %v1802_v2 = vsel %vm1790_vm9, %v1780_v39, %v1783_v56 }
 0xc7a   :  { %v1795_v0 = vsel %vm1793_vm13, %v1783_v56, 2102212464  ;;  %v1799_v45 = vsel %vm1793_vm13, %v1786_v1, 920167782  ;;  %v1612_v3 = vadd.s32 %v1611_v48, %v1607_v53  ;;  %v1794_v5 = vsel %vm1790_vm9, %v1774_v43, %v1777_v38 }
 0xc7b   :  { %v1800_v6 = vsel %vm1792_vm12, %v1783_v56, %v1799_v45  ;;  %v1803_v7 = vsel %vm1793_vm13, %v1789_v62, 1326507024  ;;  %v1796_v8 = vsel %vm1792_vm12, %v1780_v39, %v1795_v0  ;;  %v1670_v11 = vsub.s32 32, %v3884_v54 }
 0xc7c   :  { %v1801_v9 = vsel %vm1791_vm11, %v1798_v63, %v1800_v6  ;;  %v1804_v10 = vsel %vm1792_vm12, %v1786_v1, %v1803_v7  ;;  %v1613_v12 = vadd.s32 536870912, %v1612_v3  ;;  %v1797_v25 = vsel %vm1791_vm11, %v1794_v5, %v1796_v8 }
 0xc7d   :  { %v1805_v13 = vsel %vm1791_vm11, %v1802_v2, %v1804_v10  ;;  %v3937_v16 = vmul.u32.u64.low %v3878_v50, %v1801_v9  ;;  %v3938_v17 = vmul.u32.u64.high %v3878_v50, %v1801_v9, %v3937_v16  ;;  %v1655_v26 = vand.u32 2147483647, %v3858_v18 }
 0xc7e   :  { %v3942_v21 = vmul.u32.u64.low %v3878_v50, %v1805_v13  ;;  %v3943_v23 = vmul.u32.u64.high %v3878_v50, %v1805_v13, %v3942_v21  ;;  %v3945_v24 = vshrl.u32 %v1613_v12, 30  ;;  %v1682_v29 = vshrl.u32 %v3582_v61, %v1670_v11 }
 0xc7f   :  { %v1816_v28 = vadd.s32 1, %v3938_v17  ;;  %v1685_v30 = vshrl.u32 %v3583_v4, %v1670_v11  ;;  %v1813_v31 = vmul.u32 %v3878_v50, %v1797_v25  ;;  %v1681_v49 = vshll.u32 %v3581_v59, %v3884_v54 }
 0xc80   :  { %v1615_v27 = vshll.u32 %v3945_v24, 30  ;;  %vm1815_vm15 = vc.u32 %v3943_v23, %v3937_v16  ;;  %v1684_v34 = vshll.u32 %v3582_v61, %v3884_v54  ;;  %v1873_v37 = vsel %vm1872_vm14, %v3880_v41, 0 }
 0xc81   :  { %v1817_v33 = vsel %vm1815_vm15, %v1816_v28, %v3938_v17  ;;  %v1668_v39 = vshrl.u32 %v3872_v47, 5  ;;  %v1662_v50 = vand.u32 8388607, %v1655_v26  ;;  %v1672_v40 = vshll.u32 %v3578_v52, %v3884_v54 }
 0xc82   :  { %v3960_v32 = vsub.s32 %v1612_v3, %v1615_v27  ;;  %v1818_v38 = vadd.s32 %v1817_v33, %v1813_v31  ;;  %v1683_v43 = vor.u32 %v1682_v29, %v1681_v49  ;;  %v1686_v44 = vor.u32 %v1685_v30, %v1684_v34 }
 0xc83   :  { %v1673_v46 = vshrl.u32 %v3579_v55, %v1670_v11  ;;  %v1875_v53 = vand.u32 31, %v1873_v37  ;;  %v1675_v41 = vshll.u32 %v3579_v55, %v3884_v54  ;;  %v1676_v56 = vshrl.u32 %v3580_v57, %v1670_v11 }
 0xc84   :  { %v1618_v42 = vsub.s32 0, %v3960_v32  ;;  %v1819_v51 = vadd.s32 536870912, %v1818_v38  ;;  %v1678_v60 = vshll.u32 %v3580_v57, %v3884_v54  ;;  %v1679_v1 = vshrl.u32 %v3581_v59, %v1670_v11 }
 0xc85   :  { %v1674_v58 = vor.u32 %v1673_v46, %v1672_v40  ;;  %vm1690_vm0 = vcmp.lt.s32.totalorder %v1668_v39, 4  ;;  %v1677_v63 = vor.u32 %v1676_v56, %v1675_v41  ;;  %v1663_v45 = vor.u32 8388608, %v1662_v50 }
 0xc86   :  { %v2202_v47 = vmin.u32 %v1618_v42, %v3960_v32  ;;  %v3980_v62 = vshrl.u32 %v1819_v51, 30  ;;  %v1696_v0 = vsel %vm1690_vm0, %v1683_v43, 920167782  ;;  %v1680_v2 = vor.u32 %v1679_v1, %v1678_v60 }
 0xc87   :  { %v1700_v5 = vsel %vm1690_vm0, %v1686_v44, 1326507024  ;;  %v3983_v6 = vsub.s32 32, %v1875_v53  ;;  %vm1687_vm1 = vcmp.lt.s32.totalorder %v1668_v39, 1  ;;  %vm1688_vm2 = vcmp.lt.s32.totalorder %v1668_v39, 2 }
 0xc88   :  { %v1620_v48 = vclz %v2202_v47  ;;  %v1821_v3 = vshll.u32 %v3980_v62, 30  ;;  %vm1689_vm3 = vcmp.lt.s32.totalorder %v1668_v39, 3  ;;  %v1695_v54 = vsel %vm1687_vm1, %v1674_v58, %v1677_v63 }
 0xc89   :  { %v1692_v9 = vsel %vm1690_vm0, %v1680_v2, 2102212464  ;;  %v1697_v10 = vsel %vm1689_vm3, %v1680_v2, %v1696_v0  ;;  %v1699_v12 = vsel %vm1687_vm1, %v1677_v63, %v1680_v2  ;;  %v1671_v13 = vshrl.u32 %v3578_v52, %v1670_v11 }
 0xc8a   :  { %v2203_v7 = vadd.s32 4294967294, %v1620_v48  ;;  %v3986_v8 = vsub.s32 %v1818_v38, %v1821_v3  ;;  %v1698_v17 = vsel %vm1688_vm2, %v1695_v54, %v1697_v10  ;;  %v1701_v21 = vsel %vm1689_vm3, %v1683_v43, %v1700_v5 }
 0xc8b   :  { %v1702_v28 = vsel %vm1688_vm2, %v1699_v12, %v1701_v21  ;;  %v1703_v29 = vshll.u32 %v1663_v45, 8  ;;  %v1691_v30 = vsel %vm1687_vm1, %v1671_v13, %v1674_v58  ;;  %v1693_v31 = vsel %vm1689_vm3, %v1677_v63, %v1692_v9 }
 0xc8c   :  { %vm2204_vm4 = vcmp.lt.s32.totalorder %v2203_v7, 0  ;;  %v1824_v27 = vsub.s32 0, %v3986_v8  ;;  %v1888_v49 = vshrl.u32 %v3582_v61, %v3983_v6  ;;  %v1887_v42 = vshll.u32 %v3581_v59, %v1875_v53 }
 0xc8d   :  { %v3991_v25 = vsel %vm2204_vm4, 0, %v2203_v7  ;;  %v3998_v33 = vmul.u32.u64.low %v1703_v29, %v1702_v28  ;;  %v3999_v34 = vmul.u32.u64.high %v1703_v29, %v1702_v28, %v3998_v33  ;;  %v1694_v43 = vsel %vm1688_vm2, %v1691_v30, %v1693_v31 }
 0xc8e   :  { %v1628_v11 = vsub.s32 4294967266, %v3991_v25  ;;  %v4002_v38 = vmul.u32.u64.low %v1703_v29, %v1698_v17  ;;  %v4003_v50 = vmul.u32.u64.high %v1703_v29, %v1698_v17, %v4002_v38  ;;  %v2210_v40 = vmin.u32 %v1824_v27, %v3986_v8 }
 0xc8f   :  { %v1861_v44 = vand.u32 2147483647, %v3860_v19  ;;  %v4010_v46 = vshrl.u32 %v1873_v37, 5  ;;  %v1889_v51 = vor.u32 %v1888_v49, %v1887_v42  ;;  %v1890_v41 = vshll.u32 %v3582_v61, %v1875_v53 }
 0xc90   :  { %v1891_v56 = vshrl.u32 %v3583_v4, %v3983_v6  ;;  %vm1712_vm5 = vc.u32 %v3999_v34, %v4002_v38  ;;  %v1629_v47 = vadd.s32 127, %v1628_v11  ;;  %v1710_v58 = vmul.u32 %v1703_v29, %v1694_v43 }
 0xc91   :  { %v1713_v60 = vadd.s32 1, %v4003_v50  ;;  %v1879_v39 = vshrl.u32 %v3579_v55, %v3983_v6  ;;  %v1826_v1 = vclz %v2210_v40  ;;  %v1868_v37 = vand.u32 8388607, %v1861_v44 }
 0xc92   :  { %v1882_v61 = vshrl.u32 %v3580_v57, %v3983_v6  ;;  %v1885_v4 = vshrl.u32 %v3581_v59, %v3983_v6  ;;  %v1878_v48 = vshll.u32 %v3578_v52, %v1875_v53  ;;  %v1881_v0 = vshll.u32 %v3579_v55, %v1875_v53 }
 0xc93   :  { %v1714_v63 = vsel %vm1712_vm5, %v1713_v60, %v4003_v50  ;;  %v1884_v45 = vshll.u32 %v3580_v57, %v1875_v53  ;;  %v1892_v2 = vor.u32 %v1891_v56, %v1890_v41  ;;  %vm1896_vm6 = vcmp.lt.s32.totalorder %v4010_v46, 4 }
 0xc94   :  { %v1715_v3 = vadd.s32 %v1714_v63, %v1710_v58  ;;  %v1624_v5 = vsub.s32 32, %v3991_v25  ;;  %v1880_v7 = vor.u32 %v1879_v39, %v1878_v48  ;;  %v1883_v54 = vor.u32 %v1882_v61, %v1881_v0 }
 0xc95   :  { %v1886_v9 = vor.u32 %v1885_v4, %v1884_v45  ;;  %v1630_v10 = vshll.u32 %v1629_v47, 23  ;;  %v2211_v12 = vadd.s32 4294967294, %v1826_v1  ;;  %v1902_v59 = vsel %vm1896_vm6, %v1889_v51, 920167782 }
 0xc96   :  { %v1716_v13 = vadd.s32 536870912, %v1715_v3  ;;  %v1608_v55 = vadd.s32 %v3911_v36, %v3908_v35  ;;  %v1869_v17 = vor.u32 8388608, %v1868_v37  ;;  %v1906_v57 = vsel %vm1896_vm6, %v1892_v2, 1326507024 }
 0xc97   :  { %vm1893_vm7 = vcmp.lt.s32.totalorder %v4010_v46, 1  ;;  %vm1895_vm8 = vcmp.lt.s32.totalorder %v4010_v46, 3  ;;  %v1625_v36 = vshll.u32 %v3960_v32, %v3991_v25  ;;  %v1631_v29 = vor.u32 4788187, %v1630_v10 }
 0xc98   :  { %v4038_v53 = vshrl.u32 %v1716_v13, 30  ;;  %v1626_v21 = vshrl.u32 %v1608_v55, %v1624_v5  ;;  %v1901_v27 = vsel %vm1893_vm7, %v1880_v7, %v1883_v54  ;;  %v1903_v28 = vsel %vm1895_vm8, %v1886_v9, %v1902_v59 }
 0xc99   :  { %v1905_v35 = vsel %vm1893_vm7, %v1883_v54, %v1886_v9  ;;  %vm2212_vm9 = vcmp.lt.s32.totalorder %v2211_v12, 0  ;;  %vm1894_vm10 = vcmp.lt.s32.totalorder %v4010_v46, 2  ;;  %v1898_v31 = vsel %vm1896_vm6, %v1886_v9, 2102212464 }
 0xc9a   :  { %v1718_v30 = vshll.u32 %v4038_v53, 30  ;;  %v1907_v49 = vsel %vm1895_vm8, %v1889_v51, %v1906_v57  ;;  %v1909_v33 = vshll.u32 %v1869_v17, 8  ;;  %v1877_v50 = vshrl.u32 %v3578_v52, %v3983_v6 }
 0xc9b   :  { %v1904_v32 = vsel %vm1894_vm10, %v1901_v27, %v1903_v28  ;;  %v1908_v25 = vsel %vm1894_vm10, %v1905_v35, %v1907_v49  ;;  %v1627_v40 = vor.u32 %v1626_v21, %v1625_v36  ;;  %v1829_v41 = vsel %vm2212_vm9, 0, %v2211_v12 }
 0xc9c   :  { %v1719_v11 = vsub.s32 %v1715_v3, %v1718_v30  ;;  %v4062_v42 = vmul.u32.u64.low %v1909_v33, %v1908_v25  ;;  %v4063_v43 = vmul.u32.u64.high %v1909_v33, %v1908_v25, %v4062_v42  ;;  %v1897_v51 = vsel %vm1893_vm7, %v1877_v50, %v1880_v7 }
 0xc9d   :  { %v1899_v47 = vsel %vm1895_vm8, %v1883_v54, %v1898_v31  ;;  %v1632_v58 = vand.u32 2147483647, %v1631_v29  ;;  %v4069_v52 = vmul.u32.u64.low %v1909_v33, %v1904_v32  ;;  %v4070_v6 = vmul.u32.u64.high %v1909_v33, %v1904_v32, %v4069_v52 }
 0xc9e   :  { %v1721_v56 = vsub.s32 0, %v1719_v11  ;;  %v1634_v39 = vcvt.s32.f32 %v1627_v40  ;;  %v1834_v1 = vsub.s32 4294967266, %v1829_v41  ;;  %v1900_v37 = vsel %vm1894_vm10, %v1897_v51, %v1899_v47 }
 0xc9f   :  { %vm1918_vm11 = vc.u32 %v4063_v43, %v4069_v52  ;;  %v1919_v63 = vadd.s32 1, %v4070_v6  ;;  %v1916_v0 = vmul.u32 %v1909_v33, %v1900_v37  ;;  %v1830_v7 = vsub.s32 32, %v1829_v41 }
 0xca0   :  { %v2206_v60 = vmin.u32 %v1721_v56, %v1719_v11  ;;  %v1635_v4 = vmul.f32 %v1634_v39, %v1632_v58  ;;  %v1835_v45 = vadd.s32 127, %v1834_v1  ;;  %v1711_v46 = vadd.s32 %v4002_v38, %v3999_v34 }
 0xca1   :  { %v1920_v2 = vsel %vm1918_vm11, %v1919_v63, %v4070_v6  ;;  %vm1554_vm13 = vcmp.lt.s32.totalorder %v3854_v14, 0  ;;  %v1814_v59 = vadd.s32 %v3937_v16, %v3943_v23  ;;  %v1831_v36 = vshll.u32 %v3986_v8, %v1829_v41 }
 0xca2   :  { %v1723_v61 = vclz %v2206_v60  ;;  %v1921_v3 = vadd.s32 %v1920_v2, %v1916_v0  ;;  %v1636_v5 = vxor.u32 2147483648, %v1635_v4  ;;  %v1836_v13 = vshll.u32 %v1835_v45, 23 }
 0xca3   :  { %v1832_v28 = vshrl.u32 %v1814_v59, %v1830_v7  ;;  %vm4092_vm14 = vcmp.le.f32.partialorder %v1552_v20, 0.7853982  ;;  %v1638_v41 = vsub.s32 4, %v3945_v24  ;;  %vm1657_vm15 = vcmp.lt.s32.totalorder %v3858_v18, 0 }
 0xca4   :  { %v2207_v48 = vadd.s32 4294967294, %v1723_v61  ;;  %v1922_v12 = vadd.s32 536870912, %v1921_v3  ;;  %v1637_v27 = vsel %vm1554_vm13, %v1636_v5, %v1635_v4  ;;  %v1837_v29 = vor.u32 4788187, %v1836_v13 }
 0xca5   :  { %v1640_v31 = vsel %vm4092_vm14, %v3854_v14, %v1637_v27  ;;  %v1833_v49 = vor.u32 %v1832_v28, %v1831_v36  ;;  %vm4103_vm0 = vcmp.le.f32.partialorder %v1655_v26, 0.7853982  ;;  %v1741_v58 = vsub.s32 4, %v4038_v53 }
 0xca6   :  { %vm2208_vm12 = vcmp.lt.s32.totalorder %v2207_v48, 0  ;;  %v4084_v21 = vshrl.u32 %v1922_v12, 30  ;;  %v1838_v32 = vand.u32 2147483647, %v1837_v29  ;;  %3385 = vcosq.f32 %v1640_v31 }
 0xca7   :  { %v1726_v54 = vsel %vm2208_vm12, 0, %v2207_v48  ;;  %3387 = vsinq.f32 %v1640_v31  ;;  %v1840_v40 = vcvt.s32.f32 %v1833_v49  ;;  %v1639_v39 = vsel %vm1554_vm13, %v1638_v41, %v3945_v24 }
 0xca8   :  { %v1727_v9 = vsub.s32 32, %v1726_v54  ;;  %v1731_v10 = vsub.s32 4294967266, %v1726_v54  ;;  %v1728_v55 = vshll.u32 %v1719_v11, %v1726_v54  ;;  %v1924_v38 = vshll.u32 %v4084_v21, 30 }
 0xca9   :  { %v1841_v56 = vmul.f32 %v1840_v40, %v1838_v32  ;;  %v1742_v37 = vsel %vm1657_vm15, %v1741_v58, %v4038_v53  ;;  %v1917_v61 = vadd.s32 %v4069_v52, %v4063_v43  ;;  %v1641_v0 = vsel %vm4092_vm14, 0, %v1639_v39 }
 0xcaa   :  { %v1729_v17 = vshrl.u32 %v1711_v46, %v1727_v9  ;;  %v1732_v57 = vadd.s32 127, %v1731_v10  ;;  %v1925_v30 = vsub.s32 %v1921_v3, %v1924_v38  ;;  %vm1760_vm2 = vcmp.lt.s32.totalorder %v3856_v15, 0 }
 0xcab   :  { %v1842_v1 = vxor.u32 2147483648, %v1841_v56  ;;  %v1744_v53 = vsel %vm4103_vm0, 0, %v1742_v37  ;;  %v1645_v52 = vand.u32 3, %v1641_v0  ;;  %vm4126_vm3 = vcmp.le.f32.partialorder %v1758_v22, 0.7853982 }
 0xcac   :  { %v1730_v35 = vor.u32 %v1729_v17, %v1728_v55  ;;  %v1733_v34 = vshll.u32 %v1732_v57, 23  ;;  %v1927_v50 = vsub.s32 0, %v1925_v30  ;;  %v1748_v10 = vand.u32 3, %v1744_v53 }
 0xcad   :  { %v1843_v5 = vsel %vm1760_vm2, %v1842_v1, %v1841_v56  ;;  %vm1647_vm4 = vcmp.eq.s32.totalorder %v1645_v52, 0  ;;  %vm1650_vm5 = vcmp.eq.s32.totalorder %v1645_v52, 2  ;;  %vm1646_vm9 = vcmp.lt.s32.totalorder %v1645_v52, 2 }
 0xcae   :  { %v1734_v23 = vor.u32 4788187, %v1733_v34  ;;  %v1737_v11 = vcvt.s32.f32 %v1730_v35  ;;  %v2214_v25 = vmin.u32 %v1927_v50, %v1925_v30  ;;  %v1846_v59 = vsel %vm4126_vm3, %v3856_v15, %v1843_v5 }
 0xcaf   :  { %vm1753_vm6 = vcmp.eq.s32.totalorder %v1748_v10, 2  ;;  %vm1749_vm7 = vcmp.lt.s32.totalorder %v1748_v10, 2  ;;  %vm1750_vm8 = vcmp.eq.s32.totalorder %v1748_v10, 0  ;;  %vm1747_vm10 = vweird.f32 %v3858_v18 }
 0xcb0   :  { %v1735_v33 = vand.u32 2147483647, %v1734_v23  ;;  %v1929_v42 = vclz %v2214_v25  ;;  %v3386_v48 = vpop.eup %3385  ;;  %v1844_v23 = vsub.s32 4, %v3980_v62  ;;  %vm4137_vm11 = vcmp.le.f32.partialorder %v1861_v44, 0.7853982 }
 0xcb1   :  { %v3388_v45 = vpop.eup %3387  ;;  %v1651_v46 = vxor.u32 2147483648, %v3386_v48  ;;  %vm1863_vm12 = vcmp.lt.s32.totalorder %v3860_v19, 0  ;;  %vm1644_vm13 = vweird.f32 %v3854_v14 }
 0xcb2   :  { %v1738_v8 = vmul.f32 %v1737_v11, %v1735_v33  ;;  %v2215_v6 = vadd.s32 4294967294, %v1929_v42  ;;  %v1648_v54 = vxor.u32 2147483648, %v3388_v45  ;;  %v1947_v11 = vsub.s32 4, %v4084_v21 }
 0xcb3   :  { %v1652_v35 = vsel %vm1650_vm5, %v1651_v46, %v3388_v45  ;;  %v1845_v44 = vsel %vm1760_vm2, %v1844_v23, %v3980_v62  ;;  %vm1850_vm5 = vweird.f32 %v3856_v15 }
 0xcb4   :  { %v1739_v20 = vxor.u32 2147483648, %v1738_v8  ;;  %vm2216_vm1 = vcmp.lt.s32.totalorder %v2215_v6, 0  ;;  %v1649_v28 = vsel %vm1647_vm4, %v3386_v48, %v1648_v54  ;;  %v1948_v32 = vsel %vm1863_vm12, %v1947_v11, %v4084_v21 }
 0xcb5   :  { %v1932_v26 = vsel %vm2216_vm1, 0, %v2215_v6  ;;  %v1653_v16 = vsel %vm1646_vm9, %v1649_v28, %v1652_v35  ;;  %v1847_v25 = vsel %vm4126_vm3, 0, %v1845_v44  ;;  %v1950_v40 = vsel %vm4137_vm11, 0, %v1948_v32 }
 0xcb6   :  { %v1740_v47 = vsel %vm1657_vm15, %v1739_v20, %v1738_v8  ;;  %v1933_v4 = vsub.s32 32, %v1932_v26  ;;  %v1937_v63 = vsub.s32 4294967266, %v1932_v26  ;;  %v1934_v2 = vshll.u32 %v1925_v30, %v1932_v26 }
 0xcb7   :  { %v1743_v60 = vsel %vm4103_vm0, %v3858_v18, %v1740_v47  ;;  %v1654_v50 = vsel %vm1644_vm13, nan, %v1653_v16  ;;  %v1851_v20 = vand.u32 3, %v1847_v25  ;;  %v1954_v56 = vand.u32 3, %v1950_v40 }
 0xcb8   :  { %3389 = vcosq.f32 %v1743_v60  ;;  %v1935_v3 = vshrl.u32 %v1917_v61, %v1933_v4  ;;  %v1938_v24 = vadd.s32 127, %v1937_v63  ;;  %vm1953_vm4 = vweird.f32 %v3860_v19 }
 0xcb9   :  { %3391 = vsinq.f32 %v1743_v60  ;;  %vm1853_vm14 = vcmp.eq.s32.totalorder %v1851_v20, 0  ;;  %vm1856_vm15 = vcmp.eq.s32.totalorder %v1851_v20, 2  ;;  %vm1959_vm0 = vcmp.eq.s32.totalorder %v1954_v56, 2 }
 0xcba   :  { %v1936_v7 = vor.u32 %v1935_v3, %v1934_v2  ;;  %v1939_v43 = vshll.u32 %v1938_v24, 23  ;;  %3393 = vcosq.f32 %v1846_v59  ;;  %vm1956_vm1 = vcmp.eq.s32.totalorder %v1954_v56, 0 }
 0xcbb   :  { %3395 = vsinq.f32 %v1846_v59  ;;  %vm1852_vm2 = vcmp.lt.s32.totalorder %v1851_v20, 2  ;;  %vm1955_vm3 = vcmp.lt.s32.totalorder %v1954_v56, 2 }
 0xcbc   :  { %v1940_v12 = vor.u32 4788187, %v1939_v43  ;;  %v1943_v17 = vcvt.s32.f32 %v1936_v7 }
 0xcbe   :  { %v1941_v55 = vand.u32 2147483647, %v1940_v12 }
 0xcc0   :  { %v1944_v34 = vmul.f32 %v1943_v17, %v1941_v55 }
 0xcc2   :  { %v3390_v13 = vpop.eup %3389  ;;  %v1945_v29 = vxor.u32 2147483648, %v1944_v34 }
 0xcc3   :  { %v3392_v57 = vpop.eup %3391  ;;  %v1754_v27 = vxor.u32 2147483648, %v3390_v13 }
 0xcc4   :  { %v1751_v22 = vxor.u32 2147483648, %v3392_v57  ;;  %v1946_v33 = vsel %vm1863_vm12, %v1945_v29, %v1944_v34  ;;  %v3394_v8 = vpop.eup %3393 }
 0xcc5   :  { %v1755_v38 = vsel %vm1753_vm6, %v1754_v27, %v3392_v57  ;;  %v1949_v18 = vsel %vm4137_vm11, %v3860_v19, %v1946_v33  ;;  %v3396_v14 = vpop.eup %3395  ;;  %v1857_v41 = vxor.u32 2147483648, %v3394_v8 }
 0xcc6   :  { %v1752_v36 = vsel %vm1750_vm8, %v3390_v13, %v1751_v22  ;;  %3397 = vcosq.f32 %v1949_v18  ;;  %v1854_v42 = vxor.u32 2147483648, %v3396_v14 }
 0xcc7   :  { %v1756_v30 = vsel %vm1749_vm7, %v1752_v36, %v1755_v38  ;;  %3399 = vsinq.f32 %v1949_v18  ;;  %v1858_v6 = vsel %vm1856_vm15, %v1857_v41, %v3396_v14 }
 0xcc8   :  { %v1757_v49 = vsel %vm1747_vm10, nan, %v1756_v30  ;;  %v1855_v58 = vsel %vm1853_vm14, %v3394_v8, %v1854_v42 }
 0xcc9   :  { %2092 = vmatprep.mubr.f32.mxu1 %v1757_v49  ;;  %v1859_v1 = vsel %vm1852_vm2, %v1855_v58, %v1858_v6 }
 0xcca   :  { %2093 = vmatmul.mubr.f32.vlgmr.msra.gmra.mrb[14].mxu1 %v1654_v50  ;;  %v1860_v61 = vsel %vm1850_vm5, nan, %v1859_v1 }
 0xcd0   :  { %v3398_v51 = vpop.eup %3397 }
 0xcd1   :  { %v3400_v47 = vpop.eup %3399  ;;  %v1960_v62 = vxor.u32 2147483648, %v3398_v51 }
 0xcd2   :  { %v1957_v21 = vxor.u32 2147483648, %v3400_v47 }
 0xcd3   :  { %v1961_v60 = vsel %vm1959_vm0, %v1960_v62, %v3400_v47 }
 0xcd4   :  { %v1958_v39 = vsel %vm1956_vm1, %v3398_v51, %v1957_v21 }
 0xcd5   :  { %v1962_v26 = vsel %vm1955_vm3, %v1958_v39, %v1961_v60 }
 0xcd6   :  { %v1963_v37 = vsel %vm1953_vm4, nan, %v1962_v26 }
 0xcd7   :  { %2162 = vmatprep.mubr.f32.mxu0 %v1963_v37 }
 0xcd8   :  { %2163 = vmatmul.mubr.f32.vlgmr.msra.gmra.mrb[16].mxu0 %v1860_v61 }
 0xd9d   :  { %v2458_v4 = vpop.f32.mrb[14].mxu1 }
 0xd9e   :  { %v2459_v63 = vpop.f32.mrb[15].mxu1 }
 0xd9f   :  { %v2460_v48 = vadd.f32 %v2459_v63, %v2458_v4 }
 0xdab   :  { %v2493_v0 = vpop.f32.mrb[16].mxu0 }
 0xdac   :  { %v2494_v45 = vpop.f32.mrb[17].mxu0 }
 0xdad   :  { %v2495_v2 = vadd.f32 %v2494_v45, %v2493_v0 }
 0xdaf   :  { %v2165_v3 = vadd.f32 %v2495_v2, %v2460_v48 }
 0xdb1   :  { %2168 = vst [vmem:[#allocation13] sm:$0xff] %v2165_v3 }
 0xdb2   :  { %3544 = shalt.err (!%p3541_p10)
}
 0xdb3   :  { %s3545_s14 = scalar_lea.hbm %s4177_s8, 128 }
 0xdb4   :  { %p3546_p11 = scmp.ne.s32.totalorder %s4177_s8, %s3545_s14  ;;  %p3549_p12 = scmp.lt.u32.totalorder %s3545_s14, %s4177_s8 }
 0xdb6   :  { %p3551_p13 = pnand %p3549_p12, %p3546_p11 }
 0xdb8   :  { %3554 = shalt.err (!%p3551_p13)
}
 0xdb9   :  { %2178 = dma.vmem_to_hbm [thread:$0]  %s2176_s10, 128, %s4177_s8, [#allocation4]  }
 0xdba   :  { %3563 = dma.done.wait [#allocation4], 128  }
 0xdbb   :  { %3564 = vsyncadd [#allocation4], 4294967168 }
 0xdbc   :  { %2182 = vsyncpa [#allocation3], 1 }
 0xdbd   :  { %2183 = vsyncpa [#allocation6], 1 }
 0xdbe   :  { %2184 = vsyncpa [#allocation9], 1 }
 0xdbf   :  { %2185 = vsyncpa [#allocation12], 1 }
 0xdc0   :  { %2186 = vsyncpa [#allocation4], 1 }

</bundles_post_ra>
